<compile_context>
chip_gen: v5e
topology: v5e:2x2
jax: 0.10.0
libtpu: 0.0.40
codegen_flags: <defaults>
</compile_context>

<pallas_src>
import functools

import jax
import jax.numpy as jnp
from jax.experimental import pallas as pl
from jax.experimental.pallas import tpu as pltpu

NUM_CLASS = 16
HIDDEN = 500            # nn.Linear(2*num_class, 500) in simple_fusion
HIDDEN_PAD = 512        # zero-padded hidden (lane-dense, exact)
OUT_PAD = 128           # zero-padded output lanes (sliced back to NUM_CLASS)
SUBLANE = 8

N = 2                   # batch
NUM_JOINT = 10
LENGTH = 4              # T (small for the demo; module default is 32)
IN_CHANNEL = 2          # D
IMG_H = 16
IMG_W = 16

SKEL_K = NUM_JOINT * LENGTH * IN_CHANNEL     # 80   flattened skeleton features
CNN_K = 3 * LENGTH * IMG_H * IMG_W           # 3072 flattened image features
BRANCH_K = SKEL_K + CNN_K                    # 3152 packed branch-weight rows


def _islr_fused_kernel(x_ref, img_ref, wb_ref, w1_ref, w2_ref, out_ref):
    # ---- branch projections (stubs for the missing submodules) --------------
    # Skeleton stub: flatten @ W_skel.  CNN stub: spatial-mean @ W_cnn, with the
    # mean folded into wb rows [SKEL_K:], so it is one K=3072 MXU contraction.
    a = jnp.dot(x_ref[...], wb_ref[0:SKEL_K, :],
                preferred_element_type=jnp.float32)               # (Bp, C)
    b = jnp.dot(img_ref[...], wb_ref[SKEL_K:BRANCH_K, :],
                preferred_element_type=jnp.float32)               # (Bp, C)

    # ---- l2norm(v, dim=1): v / (sqrt(sum(v^2, 1)) + 1e-6) --------------------
    # Exact reciprocal (approx=False) * v keeps the 1e-4 tolerance and moves the
    # divide off the VPU path.
    a_n = a * pl.reciprocal(
        jnp.sqrt(jnp.sum(a * a, axis=1, keepdims=True)) + 1e-6, approx=False)
    b_n = b * pl.reciprocal(
        jnp.sqrt(jnp.sum(b * b, axis=1, keepdims=True)) + 1e-6, approx=False)

    # ---- stack([a_n, b_n], 2).view(N, -1) + Linear(2C, 500) -------------------
    # W1 rows were pre-permuted/split once (W1[0::2] | W1[1::2]) so the
    # interleave is two small dots — no runtime concat.  Row 2C holds b1.
    h = (jnp.dot(a_n, w1_ref[0:NUM_CLASS, :],
                 preferred_element_type=jnp.float32)
         + jnp.dot(b_n, w1_ref[NUM_CLASS:2 * NUM_CLASS, :],
                   preferred_element_type=jnp.float32)
         + w1_ref[2 * NUM_CLASS:2 * NUM_CLASS + 1, :])            # (Bp, 512)
    h = jnp.maximum(h, 0.0)        # ReLU; Dropout(p=0.5) is identity in eval

    # ---- Linear(500, num_class), lane-dense padded output ---------------------
    # w2 rows [0:512] are the (padded) weight, row 512 holds b2 (padded).
    out_ref[...] = (jnp.dot(h, w2_ref[0:HIDDEN_PAD, :],
                            preferred_element_type=jnp.float32)
                    + w2_ref[HIDDEN_PAD:HIDDEN_PAD + 1, :])       # (Bp, 128)


@jax.jit
def islr_model_forward(params, inp, image, heatmap):
    """input: (N, J, T, D)   image: (N, 3*T, H, W)   heatmap: (N, J, H, W)"""
    n = inp.shape[0]
    n_pad = max(SUBLANE, ((n + SUBLANE - 1) // SUBLANE) * SUBLANE)

    # Module does heatmap.view((-1,) + heatmap.size()[-3:]) before the cnn call.
    # TODO(synk): cnn_model.forward_with_heatmap is undefined in the source; the
    # linear stub below does not consume the (reshaped) heatmap.
    heatmap = heatmap.reshape((-1,) + heatmap.shape[-3:])
    del heatmap

    x_flat = inp.reshape(n, -1).astype(jnp.float32)               # (N, 80)
    img_flat = image.reshape(n, -1).astype(jnp.float32)           # (N, 3072)

    # Zero-pad batch to a multiple of 8 sublanes (unmasked vregs / stores).
    x_p = jnp.zeros((n_pad, SKEL_K), jnp.float32).at[:n].set(x_flat)
    img_p = jnp.zeros((n_pad, CNN_K), jnp.float32).at[:n].set(img_flat)

    out_pad = pl.pallas_call(
        _islr_fused_kernel,
        out_shape=jax.ShapeDtypeStruct((n_pad, OUT_PAD), jnp.float32),
        in_specs=[pl.BlockSpec(memory_space=pltpu.MemorySpace.VMEM)] * 5,
        out_specs=pl.BlockSpec(memory_space=pltpu.MemorySpace.VMEM),
    )(x_p, img_p, params["w_branch"], params["w1x"], params["w2x"])

    return out_pad[:n, :NUM_CLASS]


# ---------------------------------------------------------------------------
# Deterministic parameter setup + one-time parameter prep (plain JAX glue)
# ---------------------------------------------------------------------------
def init_params(key):
    ks = jax.random.split(key, 6)
    s1 = 1.0 / jnp.sqrt(2 * NUM_CLASS)
    s2 = 1.0 / jnp.sqrt(HIDDEN)
    return {
        # simple_fusion.fusion1 : Linear(2*num_class, 500)   (stored as (in, out))
        "w1": jax.random.uniform(ks[0], (2 * NUM_CLASS, HIDDEN), jnp.float32, -s1, s1),
        "b1": jax.random.uniform(ks[1], (HIDDEN,), jnp.float32, -s1, s1),
        # simple_fusion.fusion2 : Linear(500, num_class)
        "w2": jax.random.uniform(ks[2], (HIDDEN, NUM_CLASS), jnp.float32, -s2, s2),
        "b2": jax.random.uniform(ks[3], (NUM_CLASS,), jnp.float32, -s2, s2),
        # stub projections for the missing submodules (TODO(synk) above)
        "w_skel": jax.random.normal(ks[4], (SKEL_K, NUM_CLASS), jnp.float32) * 0.05,
        "w_cnn": jax.random.normal(ks[5], (3 * LENGTH, NUM_CLASS), jnp.float32) * 0.05,
    }


def prepare_fusion_params(params):
    """One-time prep (NOT on the per-forward path):
       * fold the interleave into a W1 row permutation, split into [W1[0::2];W1[1::2]],
         append b1 as an extra row, zero-pad 500 -> 512 lanes          -> w1x (40, 512)
       * zero-pad W2 to 512x128, append b2 as row 512                  -> w2x (520, 128)
       * pack the skeleton projection over the cnn projection with the image
         spatial mean folded in (repeat/ (H*W))                        -> w_branch (3152, 16)
       All padding entries are zero, so the result is exact."""
    w1, b1, w2, b2 = params["w1"], params["b1"], params["w2"], params["b2"]

    w1x = jnp.zeros((2 * NUM_CLASS + SUBLANE, HIDDEN_PAD), jnp.float32)
    w1x = w1x.at[0:NUM_CLASS, :HIDDEN].set(w1[0::2, :])
    w1x = w1x.at[NUM_CLASS:2 * NUM_CLASS, :HIDDEN].set(w1[1::2, :])
    w1x = w1x.at[2 * NUM_CLASS, :HIDDEN].set(b1)

    w2x = jnp.zeros((HIDDEN_PAD + SUBLANE, OUT_PAD), jnp.float32)
    w2x = w2x.at[:HIDDEN, :NUM_CLASS].set(w2)
    w2x = w2x.at[HIDDEN_PAD, :NUM_CLASS].set(b2)

    # pooled = mean(image, (2,3)); pooled @ w_cnn  ==  image.reshape(N,-1) @ w_cnn_big
    w_cnn_big = jnp.repeat(params["w_cnn"], IMG_H * IMG_W, axis=0) / float(IMG_H * IMG_W)
    w_branch = jnp.concatenate([params["w_skel"], w_cnn_big], axis=0)   # (3152, 16)

    prepped = dict(params)
    prepped.update(w1x=w1x, w2x=w2x, w_branch=w_branch)
    return prepped


def reference_forward(params, inp, image, heatmap):
    """Pure-JAX mirror of the PyTorch ops (stubs + l2norm + stack + view + linears)."""
    n = inp.shape[0]
    heatmap = heatmap.reshape((-1,) + heatmap.shape[-3:])   # as in the module (unused by stub)
    a = inp.reshape(n, -1) @ params["w_skel"]
    pooled = jnp.mean(image, axis=(2, 3))                   # (N, 3*T)
    b = pooled @ params["w_cnn"]

    def l2norm(v, dim):
        nrm = jnp.sqrt(jnp.sum(v * v, axis=dim))
        return v / (jnp.expand_dims(nrm, dim) + 1e-6)

    a_n = l2norm(a, 1)
    b_n = l2norm(b, 1)
    fused = jnp.stack([a_n, b_n], axis=2).reshape(n, -1)
    h = jnp.maximum(fused @ params["w1"] + params["b1"], 0.0)
    return h @ params["w2"] + params["b2"]


if __name__ == "__main__":
    key = jax.random.PRNGKey(0)
    k_p, k_in, k_im, k_hm = jax.random.split(key, 4)

    params = prepare_fusion_params(init_params(k_p))

    # input: N J T D ; image: (N, 3*T, H, W) ; heatmap: (N, J, H, W)
    inp = jax.random.normal(k_in, (N, NUM_JOINT, LENGTH, IN_CHANNEL), jnp.float32)
    image = jax.random.normal(k_im, (N, 3 * LENGTH, IMG_H, IMG_W), jnp.float32)
    heatmap = jax.random.uniform(k_hm, (N, NUM_JOINT, IMG_H, IMG_W), jnp.float32)

    out = islr_model_forward(params, inp, image, heatmap)
    out = jax.block_until_ready(out)
    assert out.shape == (N, NUM_CLASS), out.shape

    ref = reference_forward(params, inp, image, heatmap)
    max_err = float(jnp.max(jnp.abs(out - ref)))
    assert jnp.allclose(out, ref, atol=1e-4, rtol=1e-4), max_err

    print("KERNEL_OK")
</pallas_src>

<mosaic_0001>
module attributes {stable_mosaic.version = 11 : i64} {
  func.func @_islr_fused_kernel(%arg0: memref<8x80xf32, #tpu.memory_space<vmem>>, %arg1: memref<8x3072xf32, #tpu.memory_space<vmem>>, %arg2: memref<3152x16xf32, #tpu.memory_space<vmem>>, %arg3: memref<40x512xf32, #tpu.memory_space<vmem>>, %arg4: memref<520x128xf32, #tpu.memory_space<vmem>>, %arg5: memref<8x128xf32, #tpu.memory_space<vmem>>) attributes {dimension_semantics = [], scalar_prefetch = 0 : i64, scratch_operands = 0 : i64, tpu.core_type = #tpu.core_type<tc>} {
    %c0 = arith.constant 0 : index
    %c0_0 = arith.constant 0 : index
    %0 = vector.load %arg0[%c0, %c0_0] : memref<8x80xf32, #tpu.memory_space<vmem>>, vector<8x80xf32>
    %c0_1 = arith.constant 0 : index
    %c0_2 = arith.constant 0 : index
    %1 = vector.load %arg2[%c0_1, %c0_2] : memref<3152x16xf32, #tpu.memory_space<vmem>>, vector<80x16xf32>
    %cst = arith.constant dense<0.000000e+00> : vector<8x16xf32>
    %2 = tpu.matmul %0, %1, %cst {dimension_numbers = #tpu.dot_dimension_numbers<[1], [0], [0], [1], [0, 0, 1, 1], [], []>} : vector<8x80xf32>, vector<80x16xf32>, vector<8x16xf32> -> vector<8x16xf32>
    %c0_3 = arith.constant 0 : index
    %c0_4 = arith.constant 0 : index
    %3 = vector.load %arg1[%c0_3, %c0_4] : memref<8x3072xf32, #tpu.memory_space<vmem>>, vector<8x3072xf32>
    %c80 = arith.constant 80 : index
    %c0_5 = arith.constant 0 : index
    %4 = vector.load %arg2[%c80, %c0_5] : memref<3152x16xf32, #tpu.memory_space<vmem>>, vector<3072x16xf32>
    %cst_6 = arith.constant dense<0.000000e+00> : vector<8x16xf32>
    %5 = tpu.matmul %3, %4, %cst_6 {dimension_numbers = #tpu.dot_dimension_numbers<[1], [0], [0], [1], [0, 0, 1, 1], [], []>} : vector<8x3072xf32>, vector<3072x16xf32>, vector<8x16xf32> -> vector<8x16xf32>
    %6 = arith.mulf %2, %2 : vector<8x16xf32>
    %cst_7 = arith.constant dense<0.000000e+00> : vector<8xf32>
    %7 = vector.multi_reduction <add>, %6, %cst_7 [1] : vector<8x16xf32> to vector<8xf32>
    %8 = vector.shape_cast %7 : vector<8xf32> to vector<8x1xf32>
    %9 = math.sqrt %8 : vector<8x1xf32>
    %cst_8 = arith.constant 9.99999997E-7 : f32
    %10 = vector.broadcast %cst_8 : f32 to vector<8x1xf32>
    %11 = arith.addf %9, %10 : vector<8x1xf32>
    %12 = tpu.reciprocal %11 : vector<8x1xf32> -> vector<8x1xf32>
    %13 = vector.broadcast %12 : vector<8x1xf32> to vector<8x16xf32>
    %14 = arith.mulf %2, %13 : vector<8x16xf32>
    %15 = arith.mulf %5, %5 : vector<8x16xf32>
    %cst_9 = arith.constant dense<0.000000e+00> : vector<8xf32>
    %16 = vector.multi_reduction <add>, %15, %cst_9 [1] : vector<8x16xf32> to vector<8xf32>
    %17 = vector.shape_cast %16 : vector<8xf32> to vector<8x1xf32>
    %18 = math.sqrt %17 : vector<8x1xf32>
    %cst_10 = arith.constant 9.99999997E-7 : f32
    %19 = vector.broadcast %cst_10 : f32 to vector<8x1xf32>
    %20 = arith.addf %18, %19 : vector<8x1xf32>
    %21 = tpu.reciprocal %20 : vector<8x1xf32> -> vector<8x1xf32>
    %22 = vector.broadcast %21 : vector<8x1xf32> to vector<8x16xf32>
    %23 = arith.mulf %5, %22 : vector<8x16xf32>
    %c0_11 = arith.constant 0 : index
    %c0_12 = arith.constant 0 : index
    %24 = vector.load %arg3[%c0_11, %c0_12] : memref<40x512xf32, #tpu.memory_space<vmem>>, vector<16x512xf32>
    %cst_13 = arith.constant dense<0.000000e+00> : vector<8x512xf32>
    %25 = tpu.matmul %14, %24, %cst_13 {dimension_numbers = #tpu.dot_dimension_numbers<[1], [0], [0], [1], [0, 0, 1, 1], [], []>} : vector<8x16xf32>, vector<16x512xf32>, vector<8x512xf32> -> vector<8x512xf32>
    %c16 = arith.constant 16 : index
    %c0_14 = arith.constant 0 : index
    %26 = vector.load %arg3[%c16, %c0_14] : memref<40x512xf32, #tpu.memory_space<vmem>>, vector<16x512xf32>
    %cst_15 = arith.constant dense<0.000000e+00> : vector<8x512xf32>
    %27 = tpu.matmul %23, %26, %cst_15 {dimension_numbers = #tpu.dot_dimension_numbers<[1], [0], [0], [1], [0, 0, 1, 1], [], []>} : vector<8x16xf32>, vector<16x512xf32>, vector<8x512xf32> -> vector<8x512xf32>
    %28 = arith.addf %25, %27 : vector<8x512xf32>
    %c32 = arith.constant 32 : index
    %c0_16 = arith.constant 0 : index
    %29 = vector.load %arg3[%c32, %c0_16] : memref<40x512xf32, #tpu.memory_space<vmem>>, vector<1x512xf32>
    %30 = vector.broadcast %29 : vector<1x512xf32> to vector<8x512xf32>
    %31 = arith.addf %28, %30 : vector<8x512xf32>
    %cst_17 = arith.constant 0.000000e+00 : f32
    %32 = vector.broadcast %cst_17 : f32 to vector<8x512xf32>
    %33 = arith.maximumf %31, %32 : vector<8x512xf32>
    %c0_18 = arith.constant 0 : index
    %c0_19 = arith.constant 0 : index
    %34 = vector.load %arg4[%c0_18, %c0_19] : memref<520x128xf32, #tpu.memory_space<vmem>>, vector<512x128xf32>
    %cst_20 = arith.constant dense<0.000000e+00> : vector<8x128xf32>
    %35 = tpu.matmul %33, %34, %cst_20 {dimension_numbers = #tpu.dot_dimension_numbers<[1], [0], [0], [1], [0, 0, 1, 1], [], []>} : vector<8x512xf32>, vector<512x128xf32>, vector<8x128xf32> -> vector<8x128xf32>
    %c512 = arith.constant 512 : index
    %c0_21 = arith.constant 0 : index
    %36 = vector.load %arg4[%c512, %c0_21] : memref<520x128xf32, #tpu.memory_space<vmem>>, vector<1x128xf32>
    %37 = vector.broadcast %36 : vector<1x128xf32> to vector<8x128xf32>
    %38 = arith.addf %35, %37 : vector<8x128xf32>
    %c0_22 = arith.constant 0 : index
    %c0_23 = arith.constant 0 : index
    %39 = vector.load %arg5[%c0_22, %c0_23] : memref<8x128xf32, #tpu.memory_space<vmem>>, vector<8x128xf32>
    tpu.vector_store %arg5[%c0_22, %c0_23], %38 {strides = array<i32>} : memref<8x128xf32, #tpu.memory_space<vmem>>, vector<8x128xf32>,
    return
  }
}

</mosaic_0001>

<bundles_post_ra>
// kernel: islr_model_forward.1
= control target key start
LH: loop header
LB: loop body
LE: loop exit
PB: predicated region body
PF: predicated region fallthrough
CT: control target
= control target key end

     0   :  { %vm31_vm0 = vcmask 654336   ;;  %vm944_vm1 = vcmask 130048   ;;  %s2935_s2 = inlined_call_operand.vmem [shape: f32[3152,16], index: 2, kind: input, shape index: {}]   ;;  %s2936_s0 = inlined_call_operand.vmem [shape: f32[8,80], index: 0, kind: input, shape index: {}]   ;;  %s2937_s1 = inlined_call_operand.vmem [shape: f32[8,3072], index: 1, kind: input, shape index: {}]   ;;  %s2938_s4 = inlined_call_operand.vmem [shape: f32[520,128], index: 4, kind: input, shape index: {}]   ;;  %s2939_s3 = inlined_call_operand.vmem [shape: f32[40,512], index: 3, kind: input, shape index: {}]   ;;  %s2940_s5 = inlined_call_operand.vmem [shape: f32[8,128], index: 5, kind: output, shape index: {}]  }
   0x1   :  { %v30_v0 = vld [vmem:[%s2935_s2 + $0x48] sm:$0xff]  ;;  %v29_v3 = vld [vmem:[%s2935_s2 + $0x40] sm:$0xff]  ;;  %v28_v7 = vld [vmem:[%s2935_s2 + $0x38] sm:$0xff] }
   0x2   :  { %v94_v1 = vld [vmem:[%s2935_s2 + $0xc8] sm:$0xff]  ;;  %41 = vmatpush.msra.mxu0 %v30_v0  ;;  %v93_v4 = vld [vmem:[%s2935_s2 + $0xc0] sm:$0xff]  ;;  %v92_v8 = vld [vmem:[%s2935_s2 + $0xb8] sm:$0xff] }
   0x3   :  { %v110_v2 = vld [vmem:[%s2935_s2 + $0x148] sm:$0xff]  ;;  %463 = vmatpush.msra.mxu1 %v94_v1  ;;  %v109_v5 = vld [vmem:[%s2935_s2 + $0x140] sm:$0xff]  ;;  %v108_v9 = vld [vmem:[%s2935_s2 + $0x138] sm:$0xff] }
   0x4   :  { %483 = vmatpush.msra.mxu2 %v110_v2  ;;  %v126_v6 = vld [vmem:[%s2935_s2 + $0x1c8] sm:$0xff]  ;;  %42 = vmatpush.msra.mxu0 %v29_v3  ;;  %v125_v10 = vld [vmem:[%s2935_s2 + $0x1c0] sm:$0xff]  ;;  %v27_v11 = vld [vmem:[%s2935_s2 + $0x30] sm:$0xff] }
   0x5   :  { %464 = vmatpush.msra.mxu1 %v93_v4  ;;  %503 = vmatpush.msra.mxu3 %v126_v6  ;;  %v91_v12 = vld [vmem:[%s2935_s2 + $0xb0] sm:$0xff]  ;;  %v124_v14 = vld [vmem:[%s2935_s2 + $0x1b8] sm:$0xff]  ;;  %v26_v15 = vld [vmem:[%s2935_s2 + $0x28] sm:$0xff] }
   0x6   :  { %484 = vmatpush.msra.mxu2 %v109_v5  ;;  %43 = vmatpush.msra.mxu0 %v28_v7  ;;  %v107_v13 = vld [vmem:[%s2935_s2 + $0x130] sm:$0xff]  ;;  %v90_v16 = vld [vmem:[%s2935_s2 + $0xa8] sm:$0xff]  ;;  %v25_v19 = vld [vmem:[%s2935_s2 + $0x20] sm:$0xff] }
   0x7   :  { %465 = vmatpush.msra.mxu1 %v92_v8  ;;  %504 = vmatpush.msra.mxu3 %v125_v10  ;;  %v106_v17 = vld [vmem:[%s2935_s2 + $0x128] sm:$0xff]  ;;  %v123_v18 = vld [vmem:[%s2935_s2 + $0x1b0] sm:$0xff]  ;;  %v89_v20 = vld [vmem:[%s2935_s2 + $0xa0] sm:$0xff] }
   0x8   :  { %485 = vmatpush.msra.mxu2 %v108_v9  ;;  %44 = vmatpush.msra.mxu0 %v27_v11  ;;  %v105_v21 = vld [vmem:[%s2935_s2 + $0x120] sm:$0xff]  ;;  %v122_v22 = vld [vmem:[%s2935_s2 + $0x1a8] sm:$0xff]  ;;  %v24_v23 = vld [vmem:[%s2935_s2 + $0x18] sm:$0xff] }
   0x9   :  { %466 = vmatpush.msra.mxu1 %v91_v12  ;;  %505 = vmatpush.msra.mxu3 %v124_v14  ;;  %v88_v24 = vld [vmem:[%s2935_s2 + $0x98] sm:$0xff]  ;;  %v121_v26 = vld [vmem:[%s2935_s2 + $0x1a0] sm:$0xff]  ;;  %v23_v27 = vld [vmem:[%s2935_s2 + $0x10] sm:$0xff] }
   0xa   :  { %486 = vmatpush.msra.mxu2 %v107_v13  ;;  %45 = vmatpush.msra.mxu0 %v26_v15  ;;  %v104_v25 = vld [vmem:[%s2935_s2 + $0x118] sm:$0xff]  ;;  %v87_v28 = vld [vmem:[%s2935_s2 + $0x90] sm:$0xff]  ;;  %v22_v31 = vld [vmem:[%s2935_s2 + $0x8] sm:$0xff] }
   0xb   :  { %467 = vmatpush.msra.mxu1 %v90_v16  ;;  %506 = vmatpush.msra.mxu3 %v123_v18  ;;  %v103_v29 = vld [vmem:[%s2935_s2 + $0x110] sm:$0xff]  ;;  %v120_v30 = vld [vmem:[%s2935_s2 + $0x198] sm:$0xff]  ;;  %v86_v32 = vld [vmem:[%s2935_s2 + $0x88] sm:$0xff] }
   0xc   :  { %487 = vmatpush.msra.mxu2 %v106_v17  ;;  %46 = vmatpush.msra.mxu0 %v25_v19  ;;  %v102_v33 = vld [vmem:[%s2935_s2 + $0x108] sm:$0xff]  ;;  %v119_v34 = vld [vmem:[%s2935_s2 + $0x190] sm:$0xff]  ;;  %v21_v35 = vld [vmem:[%s2935_s2] sm:$0xff] }
   0xd   :  { %468 = vmatpush.msra.mxu1 %v89_v20  ;;  %507 = vmatpush.msra.mxu3 %v122_v22  ;;  %v85_v36 = vld [vmem:[%s2935_s2 + $0x80] sm:$0xff]  ;;  %v118_v38 = vld [vmem:[%s2935_s2 + $0x188] sm:$0xff]  ;;  %v84_v40 = vld [vmem:[%s2935_s2 + $0x78] sm:$0xff] }
   0xe   :  { %488 = vmatpush.msra.mxu2 %v105_v21  ;;  %47 = vmatpush.msra.mxu0 %v24_v23  ;;  %v101_v37 = vld [vmem:[%s2935_s2 + $0x100] sm:$0xff]  ;;  %v142_v39 = vld [vmem:[%s2935_s2 + $0x248] sm:$0xff]  ;;  %v100_v41 = vld [vmem:[%s2935_s2 + $0xf8] sm:$0xff] }
   0xf   :  { %469 = vmatpush.msra.mxu1 %v88_v24  ;;  %508 = vmatpush.msra.mxu3 %v121_v26  ;;  %v117_v42 = vld [vmem:[%s2935_s2 + $0x180] sm:$0xff]  ;;  %v83_v44 = vld [vmem:[%s2935_s2 + $0x70] sm:$0xff]  ;;  %v116_v46 = vld [vmem:[%s2935_s2 + $0x178] sm:$0xff] }
  0x10   :  { %489 = vmatpush.msra.mxu2 %v104_v25  ;;  %48 = vmatpush.msra.mxu0 %v23_v27  ;;  %v141_v43 = vld [vmem:[%s2935_s2 + $0x240] sm:$0xff]  ;;  %v99_v45 = vld [vmem:[%s2935_s2 + $0xf0] sm:$0xff]  ;;  %v140_v47 = vld [vmem:[%s2935_s2 + $0x238] sm:$0xff] }
  0x11   :  { %470 = vmatpush.msra.mxu1 %v87_v28  ;;  %509 = vmatpush.msra.mxu3 %v120_v30  ;;  %v82_v48 = vld [vmem:[%s2935_s2 + $0x68] sm:$0xff]  ;;  %v115_v50 = vld [vmem:[%s2935_s2 + $0x170] sm:$0xff]  ;;  %v81_v52 = vld [vmem:[%s2935_s2 + $0x60] sm:$0xff] }
  0x12   :  { %490 = vmatpush.msra.mxu2 %v103_v29  ;;  %49 = vmatpush.msra.mxu0 %v22_v31  ;;  %v98_v49 = vld [vmem:[%s2935_s2 + $0xe8] sm:$0xff]  ;;  %v139_v51 = vld [vmem:[%s2935_s2 + $0x230] sm:$0xff]  ;;  %v97_v53 = vld [vmem:[%s2935_s2 + $0xe0] sm:$0xff] }
  0x13   :  { %471 = vmatpush.msra.mxu1 %v86_v32  ;;  %510 = vmatpush.msra.mxu3 %v119_v34  ;;  %v114_v54 = vld [vmem:[%s2935_s2 + $0x168] sm:$0xff]  ;;  %v80_v56 = vld [vmem:[%s2935_s2 + $0x58] sm:$0xff]  ;;  %v113_v58 = vld [vmem:[%s2935_s2 + $0x160] sm:$0xff] }
  0x14   :  { %491 = vmatpush.msra.mxu2 %v102_v33  ;;  %50 = vmatpush.msra.mxu0 %v21_v35  ;;  %v138_v55 = vld [vmem:[%s2935_s2 + $0x228] sm:$0xff]  ;;  %v96_v57 = vld [vmem:[%s2935_s2 + $0xd8] sm:$0xff]  ;;  %v137_v59 = vld [vmem:[%s2935_s2 + $0x220] sm:$0xff] }
  0x15   :  { %472 = vmatpush.msra.mxu1 %v85_v36  ;;  %511 = vmatpush.msra.mxu3 %v118_v38  ;;  %v79_v60 = vld [vmem:[%s2935_s2 + $0x50] sm:$0xff]  ;;  %v112_v62 = vld [vmem:[%s2935_s2 + $0x158] sm:$0xff]  ;;  %v158_v0 = vld [vmem:[%s2935_s2 + $0x2c8] sm:$0xff] }
  0x16   :  { %492 = vmatpush.msra.mxu2 %v101_v37  ;;  %523 = vmatpush.msrb.mxu0 %v142_v39  ;;  %v95_v61 = vld [vmem:[%s2935_s2 + $0xd0] sm:$0xff]  ;;  %v136_v63 = vld [vmem:[%s2935_s2 + $0x218] sm:$0xff]  ;;  %v174_v1 = vld [vmem:[%s2935_s2 + $0x348] sm:$0xff] }
  0x17   :  { %473 = vmatpush.msra.mxu1 %v84_v40  ;;  %512 = vmatpush.msra.mxu3 %v117_v42  ;;  %v111_v2 = vld [vmem:[%s2935_s2 + $0x150] sm:$0xff]  ;;  %v157_v4 = vld [vmem:[%s2935_s2 + $0x2c0] sm:$0xff]  ;;  %v190_v6 = vld [vmem:[%s2935_s2 + $0x3c8] sm:$0xff] }
  0x18   :  { %493 = vmatpush.msra.mxu2 %v100_v41  ;;  %524 = vmatpush.msrb.mxu0 %v141_v43  ;;  %v135_v3 = vld [vmem:[%s2935_s2 + $0x210] sm:$0xff]  ;;  %v173_v5 = vld [vmem:[%s2935_s2 + $0x340] sm:$0xff]  ;;  %v134_v7 = vld [vmem:[%s2935_s2 + $0x208] sm:$0xff] }
  0x19   :  { %474 = vmatpush.msra.mxu1 %v83_v44  ;;  %513 = vmatpush.msra.mxu3 %v116_v46  ;;  %v156_v8 = vld [vmem:[%s2935_s2 + $0x2b8] sm:$0xff]  ;;  %v189_v10 = vld [vmem:[%s2935_s2 + $0x3c0] sm:$0xff]  ;;  %v155_v12 = vld [vmem:[%s2935_s2 + $0x2b0] sm:$0xff] }
  0x1a   :  { %494 = vmatpush.msra.mxu2 %v99_v45  ;;  %525 = vmatpush.msrb.mxu0 %v140_v47  ;;  %v172_v9 = vld [vmem:[%s2935_s2 + $0x338] sm:$0xff]  ;;  %v133_v11 = vld [vmem:[%s2935_s2 + $0x200] sm:$0xff]  ;;  %v171_v13 = vld [vmem:[%s2935_s2 + $0x330] sm:$0xff] }
  0x1b   :  { %475 = vmatpush.msra.mxu1 %v82_v48  ;;  %514 = vmatpush.msra.mxu3 %v115_v50  ;;  %v188_v14 = vld [vmem:[%s2935_s2 + $0x3b8] sm:$0xff]  ;;  %v154_v16 = vld [vmem:[%s2935_s2 + $0x2a8] sm:$0xff]  ;;  %v187_v18 = vld [vmem:[%s2935_s2 + $0x3b0] sm:$0xff] }
  0x1c   :  { %495 = vmatpush.msra.mxu2 %v98_v49  ;;  %526 = vmatpush.msrb.mxu0 %v139_v51  ;;  %v132_v15 = vld [vmem:[%s2935_s2 + $0x1f8] sm:$0xff]  ;;  %v170_v17 = vld [vmem:[%s2935_s2 + $0x328] sm:$0xff]  ;;  %v131_v19 = vld [vmem:[%s2935_s2 + $0x1f0] sm:$0xff] }
  0x1d   :  { %476 = vmatpush.msra.mxu1 %v81_v52  ;;  %515 = vmatpush.msra.mxu3 %v114_v54  ;;  %v153_v20 = vld [vmem:[%s2935_s2 + $0x2a0] sm:$0xff]  ;;  %v186_v22 = vld [vmem:[%s2935_s2 + $0x3a8] sm:$0xff]  ;;  %v152_v24 = vld [vmem:[%s2935_s2 + $0x298] sm:$0xff] }
  0x1e   :  { %496 = vmatpush.msra.mxu2 %v97_v53  ;;  %527 = vmatpush.msrb.mxu0 %v138_v55  ;;  %v169_v21 = vld [vmem:[%s2935_s2 + $0x320] sm:$0xff]  ;;  %v130_v23 = vld [vmem:[%s2935_s2 + $0x1e8] sm:$0xff]  ;;  %v168_v25 = vld [vmem:[%s2935_s2 + $0x318] sm:$0xff] }
  0x1f   :  { %477 = vmatpush.msra.mxu1 %v80_v56  ;;  %516 = vmatpush.msra.mxu3 %v113_v58  ;;  %v185_v26 = vld [vmem:[%s2935_s2 + $0x3a0] sm:$0xff]  ;;  %v151_v28 = vld [vmem:[%s2935_s2 + $0x290] sm:$0xff]  ;;  %v184_v30 = vld [vmem:[%s2935_s2 + $0x398] sm:$0xff] }
  0x20   :  { %497 = vmatpush.msra.mxu2 %v96_v57  ;;  %528 = vmatpush.msrb.mxu0 %v137_v59  ;;  %v129_v27 = vld [vmem:[%s2935_s2 + $0x1e0] sm:$0xff]  ;;  %v167_v29 = vld [vmem:[%s2935_s2 + $0x310] sm:$0xff]  ;;  %v128_v31 = vld [vmem:[%s2935_s2 + $0x1d8] sm:$0xff] }
  0x21   :  { %478 = vmatpush.msra.mxu1 %v79_v60  ;;  %517 = vmatpush.msra.mxu3 %v112_v62  ;;  %v150_v32 = vld [vmem:[%s2935_s2 + $0x288] sm:$0xff]  ;;  %v183_v34 = vld [vmem:[%s2935_s2 + $0x390] sm:$0xff]  ;;  %v149_v36 = vld [vmem:[%s2935_s2 + $0x280] sm:$0xff] }
  0x22   :  { %498 = vmatpush.msra.mxu2 %v95_v61  ;;  %529 = vmatpush.msrb.mxu0 %v136_v63  ;;  %v166_v33 = vld [vmem:[%s2935_s2 + $0x308] sm:$0xff]  ;;  %v127_v35 = vld [vmem:[%s2935_s2 + $0x1d0] sm:$0xff]  ;;  %v165_v37 = vld [vmem:[%s2935_s2 + $0x300] sm:$0xff] }
  0x23   :  { %543 = vmatpush.msrb.mxu1 %v158_v0  ;;  %518 = vmatpush.msra.mxu3 %v111_v2  ;;  %v182_v38 = vld [vmem:[%s2935_s2 + $0x388] sm:$0xff]  ;;  %v20_v39 = vld [vmem:[%s2936_s0] sm:$0xff]  ;;  %v148_v40 = vld [vmem:[%s2935_s2 + $0x278] sm:$0xff] }
  0x24   :  { %563 = vmatpush.msrb.mxu2 %v174_v1  ;;  %530 = vmatpush.msrb.mxu0 %v135_v3  ;;  %v206_v41 = vld [vmem:[%s2935_s2 + $0x448] sm:$0xff]  ;;  %v164_v42 = vld [vmem:[%s2935_s2 + $0x2f8] sm:$0xff]  ;;  %v181_v43 = vld [vmem:[%s2935_s2 + $0x380] sm:$0xff] }
  0x25   :  { %544 = vmatpush.msrb.mxu1 %v157_v4  ;;  %583 = vmatpush.msrb.mxu3 %v190_v6  ;;  %v147_v44 = vld [vmem:[%s2935_s2 + $0x270] sm:$0xff]  ;;  %v205_v45 = vld [vmem:[%s2935_s2 + $0x440] sm:$0xff]  ;;  %v180_v47 = vld [vmem:[%s2935_s2 + $0x378] sm:$0xff] }
  0x26   :  { %564 = vmatpush.msrb.mxu2 %v173_v5  ;;  %531 = vmatpush.msrb.mxu0 %v134_v7  ;;  %v163_v46 = vld [vmem:[%s2935_s2 + $0x2f0] sm:$0xff]  ;;  %v146_v48 = vld [vmem:[%s2935_s2 + $0x268] sm:$0xff]  ;;  %v204_v49 = vld [vmem:[%s2935_s2 + $0x438] sm:$0xff] }
  0x27   :  { %545 = vmatpush.msrb.mxu1 %v156_v8  ;;  %584 = vmatpush.msrb.mxu3 %v189_v10  ;;  %v162_v50 = vld [vmem:[%s2935_s2 + $0x2e8] sm:$0xff]  ;;  %v179_v51 = vld [vmem:[%s2935_s2 + $0x370] sm:$0xff]  ;;  %v145_v52 = vld [vmem:[%s2935_s2 + $0x260] sm:$0xff] }
  0x28   :  { %565 = vmatpush.msrb.mxu2 %v172_v9  ;;  %532 = vmatpush.msrb.mxu0 %v133_v11  ;;  %v203_v53 = vld [vmem:[%s2935_s2 + $0x430] sm:$0xff]  ;;  %v161_v54 = vld [vmem:[%s2935_s2 + $0x2e0] sm:$0xff]  ;;  %v178_v55 = vld [vmem:[%s2935_s2 + $0x368] sm:$0xff] }
  0x29   :  { %546 = vmatpush.msrb.mxu1 %v155_v12  ;;  %585 = vmatpush.msrb.mxu3 %v188_v14  ;;  %v144_v56 = vld [vmem:[%s2935_s2 + $0x258] sm:$0xff]  ;;  %v202_v57 = vld [vmem:[%s2935_s2 + $0x428] sm:$0xff]  ;;  %v177_v59 = vld [vmem:[%s2935_s2 + $0x360] sm:$0xff] }
  0x2a   :  { %566 = vmatpush.msrb.mxu2 %v171_v13  ;;  %533 = vmatpush.msrb.mxu0 %v132_v15  ;;  %v160_v58 = vld [vmem:[%s2935_s2 + $0x2d8] sm:$0xff]  ;;  %v143_v60 = vld [vmem:[%s2935_s2 + $0x250] sm:$0xff]  ;;  %v201_v61 = vld [vmem:[%s2935_s2 + $0x420] sm:$0xff] }
  0x2b   :  { %547 = vmatpush.msrb.mxu1 %v154_v16  ;;  %586 = vmatpush.msrb.mxu3 %v187_v18  ;;  %v159_v62 = vld [vmem:[%s2935_s2 + $0x2d0] sm:$0xff]  ;;  %v176_v63 = vld [vmem:[%s2935_s2 + $0x358] sm:$0xff]  ;;  %v55_v0 = vld [vmem:[%s2937_s1] sm:$0xff] }
  0x2c   :  { %567 = vmatpush.msrb.mxu2 %v170_v17  ;;  %534 = vmatpush.msrb.mxu0 %v131_v19  ;;  %v56_v1 = vld [vmem:[%s2937_s1 + $0x8] sm:$0xff]  ;;  %v200_v2 = vld [vmem:[%s2935_s2 + $0x418] sm:$0xff]  ;;  %v175_v5 = vld [vmem:[%s2935_s2 + $0x350] sm:$0xff] }
  0x2d   :  { %548 = vmatpush.msrb.mxu1 %v153_v20  ;;  %587 = vmatpush.msrb.mxu3 %v186_v22  ;;  %v222_v3 = vld [vmem:[%s2935_s2 + $0x4c8] sm:$0xff]  ;;  %v199_v6 = vld [vmem:[%s2935_s2 + $0x410] sm:$0xff]  ;;  %v221_v8 = vld [vmem:[%s2935_s2 + $0x4c0] sm:$0xff] }
  0x2e   :  { %568 = vmatpush.msrb.mxu2 %v169_v21  ;;  %535 = vmatpush.msrb.mxu0 %v130_v23  ;;  %v238_v4 = vld [vmem:[%s2935_s2 + $0x548] sm:$0xff]  ;;  %v57_v7 = vld [vmem:[%s2937_s1 + $0x10] sm:$0xff]  ;;  %v237_v9 = vld [vmem:[%s2935_s2 + $0x540] sm:$0xff] }
  0x2f   :  { %549 = vmatpush.msrb.mxu1 %v152_v24  ;;  %588 = vmatpush.msrb.mxu3 %v185_v26  ;;  %v254_v10 = vld [vmem:[%s2935_s2 + $0x5c8] sm:$0xff]  ;;  %v220_v12 = vld [vmem:[%s2935_s2 + $0x4b8] sm:$0xff]  ;;  %v253_v14 = vld [vmem:[%s2935_s2 + $0x5c0] sm:$0xff] }
  0x30   :  { %569 = vmatpush.msrb.mxu2 %v168_v25  ;;  %536 = vmatpush.msrb.mxu0 %v129_v27  ;;  %v198_v11 = vld [vmem:[%s2935_s2 + $0x408] sm:$0xff]  ;;  %v236_v13 = vld [vmem:[%s2935_s2 + $0x538] sm:$0xff]  ;;  %v197_v15 = vld [vmem:[%s2935_s2 + $0x400] sm:$0xff] }
  0x31   :  { %550 = vmatpush.msrb.mxu1 %v151_v28  ;;  %589 = vmatpush.msrb.mxu3 %v184_v30  ;;  %v219_v16 = vld [vmem:[%s2935_s2 + $0x4b0] sm:$0xff]  ;;  %v252_v18 = vld [vmem:[%s2935_s2 + $0x5b8] sm:$0xff]  ;;  %v218_v20 = vld [vmem:[%s2935_s2 + $0x4a8] sm:$0xff] }
  0x32   :  { %570 = vmatpush.msrb.mxu2 %v167_v29  ;;  %537 = vmatpush.msrb.mxu0 %v128_v31  ;;  %v235_v17 = vld [vmem:[%s2935_s2 + $0x530] sm:$0xff]  ;;  %v196_v19 = vld [vmem:[%s2935_s2 + $0x3f8] sm:$0xff]  ;;  %v234_v21 = vld [vmem:[%s2935_s2 + $0x528] sm:$0xff] }
  0x33   :  { %551 = vmatpush.msrb.mxu1 %v150_v32  ;;  %590 = vmatpush.msrb.mxu3 %v183_v34  ;;  %v251_v22 = vld [vmem:[%s2935_s2 + $0x5b0] sm:$0xff]  ;;  %v217_v24 = vld [vmem:[%s2935_s2 + $0x4a0] sm:$0xff]  ;;  %v250_v26 = vld [vmem:[%s2935_s2 + $0x5a8] sm:$0xff] }
  0x34   :  { %571 = vmatpush.msrb.mxu2 %v166_v33  ;;  %538 = vmatpush.msrb.mxu0 %v127_v35  ;;  %v195_v23 = vld [vmem:[%s2935_s2 + $0x3f0] sm:$0xff]  ;;  %v233_v25 = vld [vmem:[%s2935_s2 + $0x520] sm:$0xff]  ;;  %v194_v27 = vld [vmem:[%s2935_s2 + $0x3e8] sm:$0xff] }
  0x35   :  { %552 = vmatpush.msrb.mxu1 %v149_v36  ;;  %591 = vmatpush.msrb.mxu3 %v182_v38  ;;  %v216_v28 = vld [vmem:[%s2935_s2 + $0x498] sm:$0xff]  ;;  %v249_v30 = vld [vmem:[%s2935_s2 + $0x5a0] sm:$0xff]  ;;  %v215_v32 = vld [vmem:[%s2935_s2 + $0x490] sm:$0xff] }
  0x36   :  { %572 = vmatpush.msrb.mxu2 %v165_v37  ;;  %1360 = vmatmul.msk.f32.vlgmr.msra.gmra.mxu0 %vm31_vm0, %v20_v39  ;;  %v232_v29 = vld [vmem:[%s2935_s2 + $0x518] sm:$0xff]  ;;  %v193_v31 = vld [vmem:[%s2935_s2 + $0x3e0] sm:$0xff]  ;;  %v231_v33 = vld [vmem:[%s2935_s2 + $0x510] sm:$0xff] }
  0x37   :  { %553 = vmatpush.msrb.mxu1 %v148_v40  ;;  %603 = vmatpush.msra.mxu0 %v206_v41  ;;  %v248_v34 = vld [vmem:[%s2935_s2 + $0x598] sm:$0xff]  ;;  %v60_v35 = vld [vmem:[%s2937_s1 + $0x28] sm:$0xff]  ;;  %v247_v39 = vld [vmem:[%s2935_s2 + $0x590] sm:$0xff] }
  0x38   :  { %573 = vmatpush.msrb.mxu2 %v164_v42  ;;  %592 = vmatpush.msrb.mxu3 %v181_v43  ;;  %v192_v36 = vld [vmem:[%s2935_s2 + $0x3d8] sm:$0xff]  ;;  %v214_v37 = vld [vmem:[%s2935_s2 + $0x488] sm:$0xff]  ;;  %v61_v41 = vld [vmem:[%s2937_s1 + $0x30] sm:$0xff] }
  0x39   :  { %554 = vmatpush.msrb.mxu1 %v147_v44  ;;  %604 = vmatpush.msra.mxu0 %v205_v45  ;;  %v230_v38 = vld [vmem:[%s2935_s2 + $0x508] sm:$0xff]  ;;  %v58_v40 = vld [vmem:[%s2937_s1 + $0x18] sm:$0xff]  ;;  %v191_v42 = vld [vmem:[%s2935_s2 + $0x3d0] sm:$0xff] }
  0x3a   :  { %574 = vmatpush.msrb.mxu2 %v163_v46  ;;  %593 = vmatpush.msrb.mxu3 %v180_v47  ;;  %v213_v43 = vld [vmem:[%s2935_s2 + $0x480] sm:$0xff]  ;;  %v246_v45 = vld [vmem:[%s2935_s2 + $0x588] sm:$0xff] }
  0x3b   :  { %555 = vmatpush.msrb.mxu1 %v146_v48  ;;  %605 = vmatpush.msra.mxu0 %v204_v49  ;;  %v229_v44 = vld [vmem:[%s2935_s2 + $0x500] sm:$0xff]  ;;  %v270_v47 = vld [vmem:[%s2935_s2 + $0x648] sm:$0xff]  ;;  %v212_v48 = vld [vmem:[%s2935_s2 + $0x478] sm:$0xff] }
  0x3c   :  { %575 = vmatpush.msrb.mxu2 %v162_v50  ;;  %594 = vmatpush.msrb.mxu3 %v179_v51  ;;  %v59_v46 = vld [vmem:[%s2937_s1 + $0x20] sm:$0xff]  ;;  %v228_v49 = vld [vmem:[%s2935_s2 + $0x4f8] sm:$0xff] }
  0x3d   :  { %556 = vmatpush.msrb.mxu1 %v145_v52  ;;  %606 = vmatpush.msra.mxu0 %v203_v53  ;;  %v245_v50 = vld [vmem:[%s2935_s2 + $0x580] sm:$0xff]  ;;  %v211_v52 = vld [vmem:[%s2935_s2 + $0x470] sm:$0xff] }
  0x3e   :  { %576 = vmatpush.msrb.mxu2 %v161_v54  ;;  %595 = vmatpush.msrb.mxu3 %v178_v55  ;;  %v269_v51 = vld [vmem:[%s2935_s2 + $0x640] sm:$0xff]  ;;  %v227_v53 = vld [vmem:[%s2935_s2 + $0x4f0] sm:$0xff]  ;;  %v244_v54 = vld [vmem:[%s2935_s2 + $0x578] sm:$0xff] }
  0x3f   :  { %557 = vmatpush.msrb.mxu1 %v144_v56  ;;  %607 = vmatpush.msra.mxu0 %v202_v57  ;;  %v268_v55 = vld [vmem:[%s2935_s2 + $0x638] sm:$0xff]  ;;  %v210_v56 = vld [vmem:[%s2935_s2 + $0x468] sm:$0xff] }
  0x40   :  { %577 = vmatpush.msrb.mxu2 %v160_v58  ;;  %596 = vmatpush.msrb.mxu3 %v177_v59  ;;  %v226_v57 = vld [vmem:[%s2935_s2 + $0x4e8] sm:$0xff]  ;;  %v243_v58 = vld [vmem:[%s2935_s2 + $0x570] sm:$0xff]  ;;  %v62_v59 = vld [vmem:[%s2937_s1 + $0x38] sm:$0xff] }
  0x41   :  { %558 = vmatpush.msrb.mxu1 %v143_v60  ;;  %608 = vmatpush.msra.mxu0 %v201_v61  ;;  %v209_v60 = vld [vmem:[%s2935_s2 + $0x460] sm:$0xff]  ;;  %v267_v61 = vld [vmem:[%s2935_s2 + $0x630] sm:$0xff] }
  0x42   :  { %578 = vmatpush.msrb.mxu2 %v159_v62  ;;  %597 = vmatpush.msrb.mxu3 %v176_v63  ;;  %v225_v62 = vld [vmem:[%s2935_s2 + $0x4e0] sm:$0xff]  ;;  %v242_v63 = vld [vmem:[%s2935_s2 + $0x568] sm:$0xff] }
  0x43   :  { %479 = vmatmul.f32.vlgmr.msra.gmra.mxu1 %v55_v0  ;;  %499 = vmatmul.f32.vlgmr.msra.gmra.mxu2 %v56_v1  ;;  %v208_v0 = vld [vmem:[%s2935_s2 + $0x458] sm:$0xff]  ;;  %v266_v1 = vld [vmem:[%s2935_s2 + $0x628] sm:$0xff] }
  0x44   :  { %609 = vmatpush.msra.mxu0 %v200_v2  ;;  %623 = vmatpush.msra.mxu1 %v222_v3  ;;  %v224_v2 = vld [vmem:[%s2935_s2 + $0x4d8] sm:$0xff]  ;;  %v241_v3 = vld [vmem:[%s2935_s2 + $0x560] sm:$0xff] }
  0x45   :  { %643 = vmatpush.msra.mxu2 %v238_v4  ;;  %598 = vmatpush.msrb.mxu3 %v175_v5  ;;  %v207_v4 = vld [vmem:[%s2935_s2 + $0x450] sm:$0xff]  ;;  %v265_v5 = vld [vmem:[%s2935_s2 + $0x620] sm:$0xff] }
  0x46   :  { %610 = vmatpush.msra.mxu0 %v199_v6  ;;  %519 = vmatmul.f32.vlgmr.msra.gmra.mxu3 %v57_v7  ;;  %v223_v6 = vld [vmem:[%s2935_s2 + $0x4d0] sm:$0xff]  ;;  %v240_v7 = vld [vmem:[%s2935_s2 + $0x558] sm:$0xff] }
  0x47   :  { %624 = vmatpush.msra.mxu1 %v221_v8  ;;  %644 = vmatpush.msra.mxu2 %v237_v9  ;;  %v63_v8 = vld [vmem:[%s2937_s1 + $0x40] sm:$0xff]  ;;  %v64_v9 = vld [vmem:[%s2937_s1 + $0x48] sm:$0xff] }
  0x48   :  { %663 = vmatpush.msra.mxu3 %v254_v10  ;;  %611 = vmatpush.msra.mxu0 %v198_v11  ;;  %v264_v10 = vld [vmem:[%s2935_s2 + $0x618] sm:$0xff]  ;;  %v286_v11 = vld [vmem:[%s2935_s2 + $0x6c8] sm:$0xff] }
  0x49   :  { %625 = vmatpush.msra.mxu1 %v220_v12  ;;  %645 = vmatpush.msra.mxu2 %v236_v13  ;;  %v302_v12 = vld [vmem:[%s2935_s2 + $0x748] sm:$0xff]  ;;  %v239_v13 = vld [vmem:[%s2935_s2 + $0x550] sm:$0xff] }
  0x4a   :  { %664 = vmatpush.msra.mxu3 %v253_v14  ;;  %612 = vmatpush.msra.mxu0 %v197_v15  ;;  %v263_v14 = vld [vmem:[%s2935_s2 + $0x610] sm:$0xff] }
  0x4b   :  { %626 = vmatpush.msra.mxu1 %v219_v16  ;;  %646 = vmatpush.msra.mxu2 %v235_v17  ;;  %v65_v15 = vld [vmem:[%s2937_s1 + $0x50] sm:$0xff]  ;;  %v285_v16 = vld [vmem:[%s2935_s2 + $0x6c0] sm:$0xff] }
  0x4c   :  { %665 = vmatpush.msra.mxu3 %v252_v18  ;;  %613 = vmatpush.msra.mxu0 %v196_v19  ;;  %v301_v17 = vld [vmem:[%s2935_s2 + $0x740] sm:$0xff]  ;;  %v318_v18 = vld [vmem:[%s2935_s2 + $0x7c8] sm:$0xff] }
  0x4d   :  { %627 = vmatpush.msra.mxu1 %v218_v20  ;;  %647 = vmatpush.msra.mxu2 %v234_v21  ;;  %v262_v19 = vld [vmem:[%s2935_s2 + $0x608] sm:$0xff]  ;;  %v284_v20 = vld [vmem:[%s2935_s2 + $0x6b8] sm:$0xff] }
  0x4e   :  { %666 = vmatpush.msra.mxu3 %v251_v22  ;;  %614 = vmatpush.msra.mxu0 %v195_v23  ;;  %v300_v21 = vld [vmem:[%s2935_s2 + $0x738] sm:$0xff]  ;;  %v317_v22 = vld [vmem:[%s2935_s2 + $0x7c0] sm:$0xff] }
  0x4f   :  { %628 = vmatpush.msra.mxu1 %v217_v24  ;;  %648 = vmatpush.msra.mxu2 %v233_v25  ;;  %v261_v23 = vld [vmem:[%s2935_s2 + $0x600] sm:$0xff]  ;;  %v283_v24 = vld [vmem:[%s2935_s2 + $0x6b0] sm:$0xff] }
  0x50   :  { %667 = vmatpush.msra.mxu3 %v250_v26  ;;  %615 = vmatpush.msra.mxu0 %v194_v27  ;;  %v299_v25 = vld [vmem:[%s2935_s2 + $0x730] sm:$0xff]  ;;  %v316_v26 = vld [vmem:[%s2935_s2 + $0x7b8] sm:$0xff] }
  0x51   :  { %629 = vmatpush.msra.mxu1 %v216_v28  ;;  %649 = vmatpush.msra.mxu2 %v232_v29  ;;  %v260_v27 = vld [vmem:[%s2935_s2 + $0x5f8] sm:$0xff]  ;;  %v282_v28 = vld [vmem:[%s2935_s2 + $0x6a8] sm:$0xff] }
  0x52   :  { %668 = vmatpush.msra.mxu3 %v249_v30  ;;  %616 = vmatpush.msra.mxu0 %v193_v31  ;;  %v298_v29 = vld [vmem:[%s2935_s2 + $0x728] sm:$0xff]  ;;  %v315_v30 = vld [vmem:[%s2935_s2 + $0x7b0] sm:$0xff] }
  0x53   :  { %630 = vmatpush.msra.mxu1 %v215_v32  ;;  %650 = vmatpush.msra.mxu2 %v231_v33  ;;  %v259_v31 = vld [vmem:[%s2935_s2 + $0x5f0] sm:$0xff]  ;;  %v281_v32 = vld [vmem:[%s2935_s2 + $0x6a0] sm:$0xff] }
  0x54   :  { %669 = vmatpush.msra.mxu3 %v248_v34  ;;  %579 = vmatmul.f32.vlgmr.msrb.gmra.mxu2 %v60_v35  ;;  %v297_v33 = vld [vmem:[%s2935_s2 + $0x720] sm:$0xff]  ;;  %v314_v34 = vld [vmem:[%s2935_s2 + $0x7a8] sm:$0xff] }
  0x55   :  { %617 = vmatpush.msra.mxu0 %v192_v36  ;;  %631 = vmatpush.msra.mxu1 %v214_v37  ;;  %v258_v35 = vld [vmem:[%s2935_s2 + $0x5e8] sm:$0xff]  ;;  %v280_v36 = vld [vmem:[%s2935_s2 + $0x698] sm:$0xff] }
  0x56   :  { %651 = vmatpush.msra.mxu2 %v230_v38  ;;  %670 = vmatpush.msra.mxu3 %v247_v39  ;;  %v296_v37 = vld [vmem:[%s2935_s2 + $0x718] sm:$0xff]  ;;  %v313_v38 = vld [vmem:[%s2935_s2 + $0x7a0] sm:$0xff] }
  0x57   :  { %539 = vmatmul.f32.vlgmr.msrb.gmra.mxu0 %v58_v40  ;;  %599 = vmatmul.f32.vlgmr.msrb.gmra.mxu3 %v61_v41  ;;  %v257_v39 = vld [vmem:[%s2935_s2 + $0x5e0] sm:$0xff]  ;;  %v279_v40 = vld [vmem:[%s2935_s2 + $0x690] sm:$0xff] }
  0x58   :  { %618 = vmatpush.msra.mxu0 %v191_v42  ;;  %632 = vmatpush.msra.mxu1 %v213_v43  ;;  %v295_v41 = vld [vmem:[%s2935_s2 + $0x710] sm:$0xff]  ;;  %v312_v42 = vld [vmem:[%s2935_s2 + $0x798] sm:$0xff] }
  0x59   :  { %652 = vmatpush.msra.mxu2 %v229_v44  ;;  %671 = vmatpush.msra.mxu3 %v246_v45  ;;  %v256_v43 = vld [vmem:[%s2935_s2 + $0x5d8] sm:$0xff]  ;;  %v278_v44 = vld [vmem:[%s2935_s2 + $0x688] sm:$0xff] }
  0x5a   :  { %559 = vmatmul.f32.vlgmr.msrb.gmra.mxu1 %v59_v46  ;;  %683 = vmatpush.msrb.mxu0 %v270_v47  ;;  %v294_v45 = vld [vmem:[%s2935_s2 + $0x708] sm:$0xff]  ;;  %v311_v46 = vld [vmem:[%s2935_s2 + $0x790] sm:$0xff] }
  0x5b   :  { %633 = vmatpush.msra.mxu1 %v212_v48  ;;  %653 = vmatpush.msra.mxu2 %v228_v49  ;;  %v255_v47 = vld [vmem:[%s2935_s2 + $0x5d0] sm:$0xff]  ;;  %v277_v48 = vld [vmem:[%s2935_s2 + $0x680] sm:$0xff] }
  0x5c   :  { %672 = vmatpush.msra.mxu3 %v245_v50  ;;  %684 = vmatpush.msrb.mxu0 %v269_v51  ;;  %v293_v49 = vld [vmem:[%s2935_s2 + $0x700] sm:$0xff]  ;;  %v310_v50 = vld [vmem:[%s2935_s2 + $0x788] sm:$0xff]  ;;  %v66_v51 = vld [vmem:[%s2937_s1 + $0x58] sm:$0xff] }
  0x5d   :  { %634 = vmatpush.msra.mxu1 %v211_v52  ;;  %654 = vmatpush.msra.mxu2 %v227_v53  ;;  %v276_v52 = vld [vmem:[%s2935_s2 + $0x678] sm:$0xff]  ;;  %v334_v53 = vld [vmem:[%s2935_s2 + $0x848] sm:$0xff] }
  0x5e   :  { %673 = vmatpush.msra.mxu3 %v244_v54  ;;  %685 = vmatpush.msrb.mxu0 %v268_v55  ;;  %v292_v54 = vld [vmem:[%s2935_s2 + $0x6f8] sm:$0xff]  ;;  %v309_v55 = vld [vmem:[%s2935_s2 + $0x780] sm:$0xff] }
  0x5f   :  { %635 = vmatpush.msra.mxu1 %v210_v56  ;;  %655 = vmatpush.msra.mxu2 %v226_v57  ;;  %v275_v56 = vld [vmem:[%s2935_s2 + $0x670] sm:$0xff]  ;;  %v333_v57 = vld [vmem:[%s2935_s2 + $0x840] sm:$0xff] }
  0x60   :  { %674 = vmatpush.msra.mxu3 %v243_v58  ;;  %619 = vmatmul.f32.vlgmr.msra.gmra.mxu0 %v62_v59  ;;  %v291_v58 = vld [vmem:[%s2935_s2 + $0x6f0] sm:$0xff]  ;;  %v308_v59 = vld [vmem:[%s2935_s2 + $0x778] sm:$0xff] }
  0x61   :  { %636 = vmatpush.msra.mxu1 %v209_v60  ;;  %686 = vmatpush.msrb.mxu0 %v267_v61  ;;  %v274_v60 = vld [vmem:[%s2935_s2 + $0x668] sm:$0xff]  ;;  %v332_v61 = vld [vmem:[%s2935_s2 + $0x838] sm:$0xff] }
  0x62   :  { %656 = vmatpush.msra.mxu2 %v225_v62  ;;  %675 = vmatpush.msra.mxu3 %v242_v63  ;;  %v290_v62 = vld [vmem:[%s2935_s2 + $0x6e8] sm:$0xff]  ;;  %v307_v63 = vld [vmem:[%s2935_s2 + $0x770] sm:$0xff] }
  0x63   :  { %637 = vmatpush.msra.mxu1 %v208_v0  ;;  %687 = vmatpush.msrb.mxu0 %v266_v1  ;;  %v273_v0 = vld [vmem:[%s2935_s2 + $0x660] sm:$0xff]  ;;  %v331_v1 = vld [vmem:[%s2935_s2 + $0x830] sm:$0xff] }
  0x64   :  { %657 = vmatpush.msra.mxu2 %v224_v2  ;;  %676 = vmatpush.msra.mxu3 %v241_v3  ;;  %v289_v2 = vld [vmem:[%s2935_s2 + $0x6e0] sm:$0xff]  ;;  %v306_v3 = vld [vmem:[%s2935_s2 + $0x768] sm:$0xff] }
  0x65   :  { %638 = vmatpush.msra.mxu1 %v207_v4  ;;  %688 = vmatpush.msrb.mxu0 %v265_v5  ;;  %v272_v4 = vld [vmem:[%s2935_s2 + $0x658] sm:$0xff]  ;;  %v330_v5 = vld [vmem:[%s2935_s2 + $0x828] sm:$0xff] }
  0x66   :  { %658 = vmatpush.msra.mxu2 %v223_v6  ;;  %677 = vmatpush.msra.mxu3 %v240_v7  ;;  %v288_v6 = vld [vmem:[%s2935_s2 + $0x6d8] sm:$0xff]  ;;  %v305_v7 = vld [vmem:[%s2935_s2 + $0x760] sm:$0xff] }
  0x67   :  { %639 = vmatmul.f32.vlgmr.msra.gmra.mxu1 %v63_v8  ;;  %659 = vmatmul.f32.vlgmr.msra.gmra.mxu2 %v64_v9  ;;  %v271_v8 = vld [vmem:[%s2935_s2 + $0x650] sm:$0xff]  ;;  %v329_v9 = vld [vmem:[%s2935_s2 + $0x820] sm:$0xff] }
  0x68   :  { %689 = vmatpush.msrb.mxu0 %v264_v10  ;;  %703 = vmatpush.msrb.mxu1 %v286_v11  ;;  %v287_v10 = vld [vmem:[%s2935_s2 + $0x6d0] sm:$0xff]  ;;  %v304_v11 = vld [vmem:[%s2935_s2 + $0x758] sm:$0xff] }
  0x69   :  { %723 = vmatpush.msrb.mxu2 %v302_v12  ;;  %678 = vmatpush.msra.mxu3 %v239_v13  ;;  %v67_v12 = vld [vmem:[%s2937_s1 + $0x60] sm:$0xff]  ;;  %v68_v13 = vld [vmem:[%s2937_s1 + $0x68] sm:$0xff] }
  0x6a   :  { %690 = vmatpush.msrb.mxu0 %v263_v14  ;;  %679 = vmatmul.f32.vlgmr.msra.gmra.mxu3 %v65_v15  ;;  %v328_v14 = vld [vmem:[%s2935_s2 + $0x818] sm:$0xff]  ;;  %v350_v15 = vld [vmem:[%s2935_s2 + $0x8c8] sm:$0xff] }
  0x6b   :  { %704 = vmatpush.msrb.mxu1 %v285_v16  ;;  %724 = vmatpush.msrb.mxu2 %v301_v17  ;;  %v366_v16 = vld [vmem:[%s2935_s2 + $0x948] sm:$0xff]  ;;  %v303_v17 = vld [vmem:[%s2935_s2 + $0x750] sm:$0xff] }
  0x6c   :  { %743 = vmatpush.msrb.mxu3 %v318_v18  ;;  %691 = vmatpush.msrb.mxu0 %v262_v19  ;;  %v327_v18 = vld [vmem:[%s2935_s2 + $0x810] sm:$0xff] }
  0x6d   :  { %705 = vmatpush.msrb.mxu1 %v284_v20  ;;  %725 = vmatpush.msrb.mxu2 %v300_v21  ;;  %v69_v19 = vld [vmem:[%s2937_s1 + $0x70] sm:$0xff]  ;;  %v349_v20 = vld [vmem:[%s2935_s2 + $0x8c0] sm:$0xff] }
  0x6e   :  { %744 = vmatpush.msrb.mxu3 %v317_v22  ;;  %692 = vmatpush.msrb.mxu0 %v261_v23  ;;  %v365_v21 = vld [vmem:[%s2935_s2 + $0x940] sm:$0xff]  ;;  %v382_v22 = vld [vmem:[%s2935_s2 + $0x9c8] sm:$0xff] }
  0x6f   :  { %706 = vmatpush.msrb.mxu1 %v283_v24  ;;  %726 = vmatpush.msrb.mxu2 %v299_v25  ;;  %v326_v23 = vld [vmem:[%s2935_s2 + $0x808] sm:$0xff]  ;;  %v348_v24 = vld [vmem:[%s2935_s2 + $0x8b8] sm:$0xff] }
  0x70   :  { %745 = vmatpush.msrb.mxu3 %v316_v26  ;;  %693 = vmatpush.msrb.mxu0 %v260_v27  ;;  %v364_v25 = vld [vmem:[%s2935_s2 + $0x938] sm:$0xff]  ;;  %v381_v26 = vld [vmem:[%s2935_s2 + $0x9c0] sm:$0xff] }
  0x71   :  { %707 = vmatpush.msrb.mxu1 %v282_v28  ;;  %727 = vmatpush.msrb.mxu2 %v298_v29  ;;  %v325_v27 = vld [vmem:[%s2935_s2 + $0x800] sm:$0xff]  ;;  %v347_v28 = vld [vmem:[%s2935_s2 + $0x8b0] sm:$0xff] }
  0x72   :  { %746 = vmatpush.msrb.mxu3 %v315_v30  ;;  %694 = vmatpush.msrb.mxu0 %v259_v31  ;;  %v363_v29 = vld [vmem:[%s2935_s2 + $0x930] sm:$0xff]  ;;  %v380_v30 = vld [vmem:[%s2935_s2 + $0x9b8] sm:$0xff] }
  0x73   :  { %708 = vmatpush.msrb.mxu1 %v281_v32  ;;  %728 = vmatpush.msrb.mxu2 %v297_v33  ;;  %v324_v31 = vld [vmem:[%s2935_s2 + $0x7f8] sm:$0xff]  ;;  %v346_v32 = vld [vmem:[%s2935_s2 + $0x8a8] sm:$0xff] }
  0x74   :  { %747 = vmatpush.msrb.mxu3 %v314_v34  ;;  %695 = vmatpush.msrb.mxu0 %v258_v35  ;;  %v362_v33 = vld [vmem:[%s2935_s2 + $0x928] sm:$0xff]  ;;  %v379_v34 = vld [vmem:[%s2935_s2 + $0x9b0] sm:$0xff] }
  0x75   :  { %709 = vmatpush.msrb.mxu1 %v280_v36  ;;  %729 = vmatpush.msrb.mxu2 %v296_v37  ;;  %v323_v35 = vld [vmem:[%s2935_s2 + $0x7f0] sm:$0xff]  ;;  %v345_v36 = vld [vmem:[%s2935_s2 + $0x8a0] sm:$0xff] }
  0x76   :  { %748 = vmatpush.msrb.mxu3 %v313_v38  ;;  %696 = vmatpush.msrb.mxu0 %v257_v39  ;;  %v361_v37 = vld [vmem:[%s2935_s2 + $0x920] sm:$0xff]  ;;  %v378_v38 = vld [vmem:[%s2935_s2 + $0x9a8] sm:$0xff] }
  0x77   :  { %710 = vmatpush.msrb.mxu1 %v279_v40  ;;  %730 = vmatpush.msrb.mxu2 %v295_v41  ;;  %v322_v39 = vld [vmem:[%s2935_s2 + $0x7e8] sm:$0xff]  ;;  %v344_v40 = vld [vmem:[%s2935_s2 + $0x898] sm:$0xff] }
  0x78   :  { %749 = vmatpush.msrb.mxu3 %v312_v42  ;;  %697 = vmatpush.msrb.mxu0 %v256_v43  ;;  %v360_v41 = vld [vmem:[%s2935_s2 + $0x918] sm:$0xff]  ;;  %v377_v42 = vld [vmem:[%s2935_s2 + $0x9a0] sm:$0xff] }
  0x79   :  { %711 = vmatpush.msrb.mxu1 %v278_v44  ;;  %731 = vmatpush.msrb.mxu2 %v294_v45  ;;  %v321_v43 = vld [vmem:[%s2935_s2 + $0x7e0] sm:$0xff]  ;;  %v343_v44 = vld [vmem:[%s2935_s2 + $0x890] sm:$0xff] }
  0x7a   :  { %750 = vmatpush.msrb.mxu3 %v311_v46  ;;  %698 = vmatpush.msrb.mxu0 %v255_v47  ;;  %v359_v45 = vld [vmem:[%s2935_s2 + $0x910] sm:$0xff]  ;;  %v376_v46 = vld [vmem:[%s2935_s2 + $0x998] sm:$0xff] }
  0x7b   :  { %712 = vmatpush.msrb.mxu1 %v277_v48  ;;  %732 = vmatpush.msrb.mxu2 %v293_v49  ;;  %v320_v47 = vld [vmem:[%s2935_s2 + $0x7d8] sm:$0xff]  ;;  %v342_v48 = vld [vmem:[%s2935_s2 + $0x888] sm:$0xff] }
  0x7c   :  { %751 = vmatpush.msrb.mxu3 %v310_v50  ;;  %699 = vmatmul.f32.vlgmr.msrb.gmra.mxu0 %v66_v51  ;;  %v358_v49 = vld [vmem:[%s2935_s2 + $0x908] sm:$0xff]  ;;  %v375_v50 = vld [vmem:[%s2935_s2 + $0x990] sm:$0xff] }
  0x7d   :  { %713 = vmatpush.msrb.mxu1 %v276_v52  ;;  %763 = vmatpush.msra.mxu0 %v334_v53  ;;  %v319_v51 = vld [vmem:[%s2935_s2 + $0x7d0] sm:$0xff]  ;;  %v341_v52 = vld [vmem:[%s2935_s2 + $0x880] sm:$0xff] }
  0x7e   :  { %733 = vmatpush.msrb.mxu2 %v292_v54  ;;  %752 = vmatpush.msrb.mxu3 %v309_v55  ;;  %v357_v53 = vld [vmem:[%s2935_s2 + $0x900] sm:$0xff]  ;;  %v374_v54 = vld [vmem:[%s2935_s2 + $0x988] sm:$0xff]  ;;  %v70_v55 = vld [vmem:[%s2937_s1 + $0x78] sm:$0xff] }
  0x7f   :  { %714 = vmatpush.msrb.mxu1 %v275_v56  ;;  %764 = vmatpush.msra.mxu0 %v333_v57  ;;  %v340_v56 = vld [vmem:[%s2935_s2 + $0x878] sm:$0xff]  ;;  %v398_v57 = vld [vmem:[%s2935_s2 + $0xa48] sm:$0xff] }
  0x80   :  { %734 = vmatpush.msrb.mxu2 %v291_v58  ;;  %753 = vmatpush.msrb.mxu3 %v308_v59  ;;  %v356_v58 = vld [vmem:[%s2935_s2 + $0x8f8] sm:$0xff]  ;;  %v373_v59 = vld [vmem:[%s2935_s2 + $0x980] sm:$0xff] }
  0x81   :  { %715 = vmatpush.msrb.mxu1 %v274_v60  ;;  %765 = vmatpush.msra.mxu0 %v332_v61  ;;  %v339_v60 = vld [vmem:[%s2935_s2 + $0x870] sm:$0xff]  ;;  %v397_v61 = vld [vmem:[%s2935_s2 + $0xa40] sm:$0xff] }
  0x82   :  { %735 = vmatpush.msrb.mxu2 %v290_v62  ;;  %754 = vmatpush.msrb.mxu3 %v307_v63  ;;  %v355_v62 = vld [vmem:[%s2935_s2 + $0x8f0] sm:$0xff]  ;;  %v372_v63 = vld [vmem:[%s2935_s2 + $0x978] sm:$0xff] }
  0x83   :  { %716 = vmatpush.msrb.mxu1 %v273_v0  ;;  %766 = vmatpush.msra.mxu0 %v331_v1  ;;  %v338_v0 = vld [vmem:[%s2935_s2 + $0x868] sm:$0xff]  ;;  %v396_v1 = vld [vmem:[%s2935_s2 + $0xa38] sm:$0xff] }
  0x84   :  { %736 = vmatpush.msrb.mxu2 %v289_v2  ;;  %755 = vmatpush.msrb.mxu3 %v306_v3  ;;  %v354_v2 = vld [vmem:[%s2935_s2 + $0x8e8] sm:$0xff]  ;;  %v371_v3 = vld [vmem:[%s2935_s2 + $0x970] sm:$0xff] }
  0x85   :  { %717 = vmatpush.msrb.mxu1 %v272_v4  ;;  %767 = vmatpush.msra.mxu0 %v330_v5  ;;  %v337_v4 = vld [vmem:[%s2935_s2 + $0x860] sm:$0xff]  ;;  %v395_v5 = vld [vmem:[%s2935_s2 + $0xa30] sm:$0xff] }
  0x86   :  { %737 = vmatpush.msrb.mxu2 %v288_v6  ;;  %756 = vmatpush.msrb.mxu3 %v305_v7  ;;  %v353_v6 = vld [vmem:[%s2935_s2 + $0x8e0] sm:$0xff]  ;;  %v370_v7 = vld [vmem:[%s2935_s2 + $0x968] sm:$0xff] }
  0x87   :  { %718 = vmatpush.msrb.mxu1 %v271_v8  ;;  %768 = vmatpush.msra.mxu0 %v329_v9  ;;  %v336_v8 = vld [vmem:[%s2935_s2 + $0x858] sm:$0xff]  ;;  %v394_v9 = vld [vmem:[%s2935_s2 + $0xa28] sm:$0xff] }
  0x88   :  { %738 = vmatpush.msrb.mxu2 %v287_v10  ;;  %757 = vmatpush.msrb.mxu3 %v304_v11  ;;  %v352_v10 = vld [vmem:[%s2935_s2 + $0x8d8] sm:$0xff]  ;;  %v369_v11 = vld [vmem:[%s2935_s2 + $0x960] sm:$0xff] }
  0x89   :  { %719 = vmatmul.f32.vlgmr.msrb.gmra.mxu1 %v67_v12  ;;  %739 = vmatmul.f32.vlgmr.msrb.gmra.mxu2 %v68_v13  ;;  %v335_v12 = vld [vmem:[%s2935_s2 + $0x850] sm:$0xff]  ;;  %v393_v13 = vld [vmem:[%s2935_s2 + $0xa20] sm:$0xff] }
  0x8a   :  { %769 = vmatpush.msra.mxu0 %v328_v14  ;;  %783 = vmatpush.msra.mxu1 %v350_v15  ;;  %v351_v14 = vld [vmem:[%s2935_s2 + $0x8d0] sm:$0xff]  ;;  %v368_v15 = vld [vmem:[%s2935_s2 + $0x958] sm:$0xff] }
  0x8b   :  { %803 = vmatpush.msra.mxu2 %v366_v16  ;;  %758 = vmatpush.msrb.mxu3 %v303_v17  ;;  %v71_v16 = vld [vmem:[%s2937_s1 + $0x80] sm:$0xff]  ;;  %v72_v17 = vld [vmem:[%s2937_s1 + $0x88] sm:$0xff] }
  0x8c   :  { %770 = vmatpush.msra.mxu0 %v327_v18  ;;  %759 = vmatmul.f32.vlgmr.msrb.gmra.mxu3 %v69_v19  ;;  %v392_v18 = vld [vmem:[%s2935_s2 + $0xa18] sm:$0xff]  ;;  %v414_v19 = vld [vmem:[%s2935_s2 + $0xac8] sm:$0xff] }
  0x8d   :  { %784 = vmatpush.msra.mxu1 %v349_v20  ;;  %804 = vmatpush.msra.mxu2 %v365_v21  ;;  %v430_v20 = vld [vmem:[%s2935_s2 + $0xb48] sm:$0xff]  ;;  %v367_v21 = vld [vmem:[%s2935_s2 + $0x950] sm:$0xff] }
  0x8e   :  { %823 = vmatpush.msra.mxu3 %v382_v22  ;;  %771 = vmatpush.msra.mxu0 %v326_v23  ;;  %v391_v22 = vld [vmem:[%s2935_s2 + $0xa10] sm:$0xff] }
  0x8f   :  { %785 = vmatpush.msra.mxu1 %v348_v24  ;;  %805 = vmatpush.msra.mxu2 %v364_v25  ;;  %v73_v23 = vld [vmem:[%s2937_s1 + $0x90] sm:$0xff]  ;;  %v413_v24 = vld [vmem:[%s2935_s2 + $0xac0] sm:$0xff] }
  0x90   :  { %824 = vmatpush.msra.mxu3 %v381_v26  ;;  %772 = vmatpush.msra.mxu0 %v325_v27  ;;  %v429_v25 = vld [vmem:[%s2935_s2 + $0xb40] sm:$0xff]  ;;  %v446_v26 = vld [vmem:[%s2935_s2 + $0xbc8] sm:$0xff] }
  0x91   :  { %786 = vmatpush.msra.mxu1 %v347_v28  ;;  %806 = vmatpush.msra.mxu2 %v363_v29  ;;  %v390_v27 = vld [vmem:[%s2935_s2 + $0xa08] sm:$0xff]  ;;  %v412_v28 = vld [vmem:[%s2935_s2 + $0xab8] sm:$0xff] }
  0x92   :  { %825 = vmatpush.msra.mxu3 %v380_v30  ;;  %773 = vmatpush.msra.mxu0 %v324_v31  ;;  %v428_v29 = vld [vmem:[%s2935_s2 + $0xb38] sm:$0xff]  ;;  %v445_v30 = vld [vmem:[%s2935_s2 + $0xbc0] sm:$0xff] }
  0x93   :  { %787 = vmatpush.msra.mxu1 %v346_v32  ;;  %807 = vmatpush.msra.mxu2 %v362_v33  ;;  %v389_v31 = vld [vmem:[%s2935_s2 + $0xa00] sm:$0xff]  ;;  %v411_v32 = vld [vmem:[%s2935_s2 + $0xab0] sm:$0xff] }
  0x94   :  { %826 = vmatpush.msra.mxu3 %v379_v34  ;;  %774 = vmatpush.msra.mxu0 %v323_v35  ;;  %v427_v33 = vld [vmem:[%s2935_s2 + $0xb30] sm:$0xff]  ;;  %v444_v34 = vld [vmem:[%s2935_s2 + $0xbb8] sm:$0xff] }
  0x95   :  { %788 = vmatpush.msra.mxu1 %v345_v36  ;;  %808 = vmatpush.msra.mxu2 %v361_v37  ;;  %v388_v35 = vld [vmem:[%s2935_s2 + $0x9f8] sm:$0xff]  ;;  %v410_v36 = vld [vmem:[%s2935_s2 + $0xaa8] sm:$0xff] }
  0x96   :  { %827 = vmatpush.msra.mxu3 %v378_v38  ;;  %775 = vmatpush.msra.mxu0 %v322_v39  ;;  %v426_v37 = vld [vmem:[%s2935_s2 + $0xb28] sm:$0xff]  ;;  %v443_v38 = vld [vmem:[%s2935_s2 + $0xbb0] sm:$0xff] }
  0x97   :  { %789 = vmatpush.msra.mxu1 %v344_v40  ;;  %809 = vmatpush.msra.mxu2 %v360_v41  ;;  %v387_v39 = vld [vmem:[%s2935_s2 + $0x9f0] sm:$0xff]  ;;  %v409_v40 = vld [vmem:[%s2935_s2 + $0xaa0] sm:$0xff] }
  0x98   :  { %828 = vmatpush.msra.mxu3 %v377_v42  ;;  %776 = vmatpush.msra.mxu0 %v321_v43  ;;  %v425_v41 = vld [vmem:[%s2935_s2 + $0xb20] sm:$0xff]  ;;  %v442_v42 = vld [vmem:[%s2935_s2 + $0xba8] sm:$0xff] }
  0x99   :  { %790 = vmatpush.msra.mxu1 %v343_v44  ;;  %810 = vmatpush.msra.mxu2 %v359_v45  ;;  %v386_v43 = vld [vmem:[%s2935_s2 + $0x9e8] sm:$0xff]  ;;  %v408_v44 = vld [vmem:[%s2935_s2 + $0xa98] sm:$0xff] }
  0x9a   :  { %829 = vmatpush.msra.mxu3 %v376_v46  ;;  %777 = vmatpush.msra.mxu0 %v320_v47  ;;  %v424_v45 = vld [vmem:[%s2935_s2 + $0xb18] sm:$0xff]  ;;  %v441_v46 = vld [vmem:[%s2935_s2 + $0xba0] sm:$0xff] }
  0x9b   :  { %791 = vmatpush.msra.mxu1 %v342_v48  ;;  %811 = vmatpush.msra.mxu2 %v358_v49  ;;  %v385_v47 = vld [vmem:[%s2935_s2 + $0x9e0] sm:$0xff]  ;;  %v407_v48 = vld [vmem:[%s2935_s2 + $0xa90] sm:$0xff] }
  0x9c   :  { %830 = vmatpush.msra.mxu3 %v375_v50  ;;  %778 = vmatpush.msra.mxu0 %v319_v51  ;;  %v423_v49 = vld [vmem:[%s2935_s2 + $0xb10] sm:$0xff]  ;;  %v440_v50 = vld [vmem:[%s2935_s2 + $0xb98] sm:$0xff] }
  0x9d   :  { %792 = vmatpush.msra.mxu1 %v341_v52  ;;  %812 = vmatpush.msra.mxu2 %v357_v53  ;;  %v384_v51 = vld [vmem:[%s2935_s2 + $0x9d8] sm:$0xff]  ;;  %v406_v52 = vld [vmem:[%s2935_s2 + $0xa88] sm:$0xff] }
  0x9e   :  { %831 = vmatpush.msra.mxu3 %v374_v54  ;;  %779 = vmatmul.f32.vlgmr.msra.gmra.mxu0 %v70_v55  ;;  %v422_v53 = vld [vmem:[%s2935_s2 + $0xb08] sm:$0xff]  ;;  %v439_v54 = vld [vmem:[%s2935_s2 + $0xb90] sm:$0xff] }
  0x9f   :  { %793 = vmatpush.msra.mxu1 %v340_v56  ;;  %843 = vmatpush.msrb.mxu0 %v398_v57  ;;  %v383_v55 = vld [vmem:[%s2935_s2 + $0x9d0] sm:$0xff]  ;;  %v405_v56 = vld [vmem:[%s2935_s2 + $0xa80] sm:$0xff] }
  0xa0   :  { %813 = vmatpush.msra.mxu2 %v356_v58  ;;  %832 = vmatpush.msra.mxu3 %v373_v59  ;;  %v421_v57 = vld [vmem:[%s2935_s2 + $0xb00] sm:$0xff]  ;;  %v438_v58 = vld [vmem:[%s2935_s2 + $0xb88] sm:$0xff]  ;;  %v74_v59 = vld [vmem:[%s2937_s1 + $0x98] sm:$0xff] }
  0xa1   :  { %794 = vmatpush.msra.mxu1 %v339_v60  ;;  %844 = vmatpush.msrb.mxu0 %v397_v61  ;;  %v404_v60 = vld [vmem:[%s2935_s2 + $0xa78] sm:$0xff]  ;;  %v462_v61 = vld [vmem:[%s2935_s2 + $0xc48] sm:$0xff] }
  0xa2   :  { %814 = vmatpush.msra.mxu2 %v355_v62  ;;  %833 = vmatpush.msra.mxu3 %v372_v63  ;;  %v420_v62 = vld [vmem:[%s2935_s2 + $0xaf8] sm:$0xff]  ;;  %v437_v63 = vld [vmem:[%s2935_s2 + $0xb80] sm:$0xff] }
  0xa3   :  { %795 = vmatpush.msra.mxu1 %v338_v0  ;;  %845 = vmatpush.msrb.mxu0 %v396_v1  ;;  %v403_v0 = vld [vmem:[%s2935_s2 + $0xa70] sm:$0xff]  ;;  %v461_v1 = vld [vmem:[%s2935_s2 + $0xc40] sm:$0xff] }
  0xa4   :  { %815 = vmatpush.msra.mxu2 %v354_v2  ;;  %834 = vmatpush.msra.mxu3 %v371_v3  ;;  %v419_v2 = vld [vmem:[%s2935_s2 + $0xaf0] sm:$0xff]  ;;  %v436_v3 = vld [vmem:[%s2935_s2 + $0xb78] sm:$0xff] }
  0xa5   :  { %796 = vmatpush.msra.mxu1 %v337_v4  ;;  %846 = vmatpush.msrb.mxu0 %v395_v5  ;;  %v402_v4 = vld [vmem:[%s2935_s2 + $0xa68] sm:$0xff]  ;;  %v460_v5 = vld [vmem:[%s2935_s2 + $0xc38] sm:$0xff] }
  0xa6   :  { %816 = vmatpush.msra.mxu2 %v353_v6  ;;  %835 = vmatpush.msra.mxu3 %v370_v7  ;;  %v418_v6 = vld [vmem:[%s2935_s2 + $0xae8] sm:$0xff]  ;;  %v435_v7 = vld [vmem:[%s2935_s2 + $0xb70] sm:$0xff] }
  0xa7   :  { %797 = vmatpush.msra.mxu1 %v336_v8  ;;  %847 = vmatpush.msrb.mxu0 %v394_v9  ;;  %v401_v8 = vld [vmem:[%s2935_s2 + $0xa60] sm:$0xff]  ;;  %v459_v9 = vld [vmem:[%s2935_s2 + $0xc30] sm:$0xff] }
  0xa8   :  { %817 = vmatpush.msra.mxu2 %v352_v10  ;;  %836 = vmatpush.msra.mxu3 %v369_v11  ;;  %v417_v10 = vld [vmem:[%s2935_s2 + $0xae0] sm:$0xff]  ;;  %v434_v11 = vld [vmem:[%s2935_s2 + $0xb68] sm:$0xff] }
  0xa9   :  { %798 = vmatpush.msra.mxu1 %v335_v12  ;;  %848 = vmatpush.msrb.mxu0 %v393_v13  ;;  %v400_v12 = vld [vmem:[%s2935_s2 + $0xa58] sm:$0xff]  ;;  %v458_v13 = vld [vmem:[%s2935_s2 + $0xc28] sm:$0xff] }
  0xaa   :  { %818 = vmatpush.msra.mxu2 %v351_v14  ;;  %837 = vmatpush.msra.mxu3 %v368_v15  ;;  %v416_v14 = vld [vmem:[%s2935_s2 + $0xad8] sm:$0xff]  ;;  %v433_v15 = vld [vmem:[%s2935_s2 + $0xb60] sm:$0xff] }
  0xab   :  { %799 = vmatmul.f32.vlgmr.msra.gmra.mxu1 %v71_v16  ;;  %819 = vmatmul.f32.vlgmr.msra.gmra.mxu2 %v72_v17  ;;  %v399_v16 = vld [vmem:[%s2935_s2 + $0xa50] sm:$0xff]  ;;  %v457_v17 = vld [vmem:[%s2935_s2 + $0xc20] sm:$0xff] }
  0xac   :  { %849 = vmatpush.msrb.mxu0 %v392_v18  ;;  %863 = vmatpush.msrb.mxu1 %v414_v19  ;;  %v415_v18 = vld [vmem:[%s2935_s2 + $0xad0] sm:$0xff]  ;;  %v432_v19 = vld [vmem:[%s2935_s2 + $0xb58] sm:$0xff] }
  0xad   :  { %883 = vmatpush.msrb.mxu2 %v430_v20  ;;  %838 = vmatpush.msra.mxu3 %v367_v21  ;;  %v75_v20 = vld [vmem:[%s2937_s1 + $0xa0] sm:$0xff]  ;;  %v76_v21 = vld [vmem:[%s2937_s1 + $0xa8] sm:$0xff] }
  0xae   :  { %850 = vmatpush.msrb.mxu0 %v391_v22  ;;  %839 = vmatmul.f32.vlgmr.msra.gmra.mxu3 %v73_v23  ;;  %v456_v22 = vld [vmem:[%s2935_s2 + $0xc18] sm:$0xff]  ;;  %v431_v23 = vld [vmem:[%s2935_s2 + $0xb50] sm:$0xff] }
  0xaf   :  { %864 = vmatpush.msrb.mxu1 %v413_v24  ;;  %884 = vmatpush.msrb.mxu2 %v429_v25  ;;  %v77_v24 = vld [vmem:[%s2937_s1 + $0xb0] sm:$0xff] }
  0xb0   :  { %903 = vmatpush.msrb.mxu3 %v446_v26  ;;  %851 = vmatpush.msrb.mxu0 %v390_v27  ;;  %v455_v25 = vld [vmem:[%s2935_s2 + $0xc10] sm:$0xff]  ;;  %v454_v26 = vld [vmem:[%s2935_s2 + $0xc08] sm:$0xff]  ;;  %v453_v27 = vld [vmem:[%s2935_s2 + $0xc00] sm:$0xff] }
  0xb1   :  { %865 = vmatpush.msrb.mxu1 %v412_v28  ;;  %885 = vmatpush.msrb.mxu2 %v428_v29  ;;  %v452_v28 = vld [vmem:[%s2935_s2 + $0xbf8] sm:$0xff]  ;;  %v451_v29 = vld [vmem:[%s2935_s2 + $0xbf0] sm:$0xff] }
  0xb2   :  { %904 = vmatpush.msrb.mxu3 %v445_v30  ;;  %852 = vmatpush.msrb.mxu0 %v389_v31  ;;  %v450_v30 = vld [vmem:[%s2935_s2 + $0xbe8] sm:$0xff]  ;;  %v449_v31 = vld [vmem:[%s2935_s2 + $0xbe0] sm:$0xff] }
  0xb3   :  { %866 = vmatpush.msrb.mxu1 %v411_v32  ;;  %886 = vmatpush.msrb.mxu2 %v427_v33  ;;  %v448_v32 = vld [vmem:[%s2935_s2 + $0xbd8] sm:$0xff]  ;;  %v447_v33 = vld [vmem:[%s2935_s2 + $0xbd0] sm:$0xff] }
  0xb4   :  { %905 = vmatpush.msrb.mxu3 %v444_v34  ;;  %853 = vmatpush.msrb.mxu0 %v388_v35  ;;  %v78_v34 = vld [vmem:[%s2937_s1 + $0xb8] sm:$0xff]  ;;  %v2666_v35 = vpop.f32.mrf.mxu0 }
  0xb5   :  { %867 = vmatpush.msrb.mxu1 %v410_v36  ;;  %887 = vmatpush.msrb.mxu2 %v426_v37 }
  0xb6   :  { %906 = vmatpush.msrb.mxu3 %v443_v38  ;;  %854 = vmatpush.msrb.mxu0 %v387_v39 }
  0xb7   :  { %868 = vmatpush.msrb.mxu1 %v409_v40  ;;  %888 = vmatpush.msrb.mxu2 %v425_v41 }
  0xb8   :  { %907 = vmatpush.msrb.mxu3 %v442_v42  ;;  %855 = vmatpush.msrb.mxu0 %v386_v43 }
  0xb9   :  { %869 = vmatpush.msrb.mxu1 %v408_v44  ;;  %889 = vmatpush.msrb.mxu2 %v424_v45 }
  0xba   :  { %908 = vmatpush.msrb.mxu3 %v441_v46  ;;  %856 = vmatpush.msrb.mxu0 %v385_v47 }
  0xbb   :  { %870 = vmatpush.msrb.mxu1 %v407_v48  ;;  %890 = vmatpush.msrb.mxu2 %v423_v49 }
  0xbc   :  { %909 = vmatpush.msrb.mxu3 %v440_v50  ;;  %857 = vmatpush.msrb.mxu0 %v384_v51 }
  0xbd   :  { %871 = vmatpush.msrb.mxu1 %v406_v52  ;;  %891 = vmatpush.msrb.mxu2 %v422_v53 }
  0xbe   :  { %910 = vmatpush.msrb.mxu3 %v439_v54  ;;  %858 = vmatpush.msrb.mxu0 %v383_v55 }
  0xbf   :  { %872 = vmatpush.msrb.mxu1 %v405_v56  ;;  %892 = vmatpush.msrb.mxu2 %v421_v57 }
  0xc0   :  { %911 = vmatpush.msrb.mxu3 %v438_v58  ;;  %859 = vmatmul.f32.vlgmr.msrb.gmra.mxu0 %v74_v59  ;;  %v480_v37 = vpop.f32.mrf.mxu1 }
  0xc1   :  { %873 = vmatpush.msrb.mxu1 %v404_v60  ;;  %923 = vmatpush.msra.mxu0 %v462_v61 }
  0xc2   :  { %893 = vmatpush.msrb.mxu2 %v420_v62  ;;  %912 = vmatpush.msrb.mxu3 %v437_v63 }
  0xc3   :  { %874 = vmatpush.msrb.mxu1 %v403_v0  ;;  %924 = vmatpush.msra.mxu0 %v461_v1 }
  0xc4   :  { %894 = vmatpush.msrb.mxu2 %v419_v2  ;;  %913 = vmatpush.msrb.mxu3 %v436_v3 }
  0xc5   :  { %875 = vmatpush.msrb.mxu1 %v402_v4  ;;  %925 = vmatpush.msra.mxu0 %v460_v5 }
  0xc6   :  { %895 = vmatpush.msrb.mxu2 %v418_v6  ;;  %914 = vmatpush.msrb.mxu3 %v435_v7  ;;  %v500_v36 = vpop.f32.mrf.mxu2 }
  0xc7   :  { %876 = vmatpush.msrb.mxu1 %v401_v8  ;;  %926 = vmatpush.msra.mxu0 %v459_v9  ;;  %v501_v38 = vadd.f32 %v500_v36, %v480_v37  ;;  %v1012_v36 = vld [vmem:[%s2939_s3 + $0x20] sm:$0xff] }
  0xc8   :  { %896 = vmatpush.msrb.mxu2 %v417_v10  ;;  %915 = vmatpush.msrb.mxu3 %v434_v11  ;;  %v1008_v37 = vld [vmem:[%s2939_s3] sm:$0xff] }
  0xc9   :  { %877 = vmatpush.msrb.mxu1 %v400_v12  ;;  %927 = vmatpush.msra.mxu0 %v458_v13  ;;  %v520_v39 = vpop.f32.mrf.mxu3 }
  0xca   :  { %897 = vmatpush.msrb.mxu2 %v416_v14  ;;  %916 = vmatpush.msrb.mxu3 %v433_v15  ;;  %v521_v40 = vadd.f32 %v520_v39, %v501_v38  ;;  %v1023_v38 = vld [vmem:[%s2939_s3 + $0x78] sm:$0xff]  ;;  %v1013_v39 = vld [vmem:[%s2939_s3 + $0x28] sm:$0xff] }
  0xcb   :  { %878 = vmatpush.msrb.mxu1 %v399_v16  ;;  %928 = vmatpush.msra.mxu0 %v457_v17 }
  0xcc   :  { %898 = vmatpush.msrb.mxu2 %v415_v18  ;;  %917 = vmatpush.msrb.mxu3 %v432_v19 }
  0xcd   :  { %879 = vmatmul.f32.vlgmr.msrb.gmra.mxu1 %v75_v20  ;;  %899 = vmatmul.f32.vlgmr.msrb.gmra.mxu2 %v76_v21  ;;  %v943_v21 = vmul.f32 %v2666_v35, %v2666_v35 }
  0xce   :  { %929 = vmatpush.msra.mxu0 %v456_v22  ;;  %918 = vmatpush.msrb.mxu3 %v431_v23 }
  0xcf   :  { %919 = vmatmul.f32.vlgmr.msrb.gmra.mxu3 %v77_v24  ;;  %v945_v22 = vsel %vm944_vm1, %v943_v21, 0.0  ;;  %v1021_v24 = vld [vmem:[%s2939_s3 + $0x68] sm:$0xff]  ;;  %v1011_v21 = vld [vmem:[%s2939_s3 + $0x18] sm:$0xff] }
  0xd0   :  { %930 = vmatpush.msra.mxu0 %v455_v25  ;;  %v1017_v25 = vld [vmem:[%s2939_s3 + $0x48] sm:$0xff]  ;;  %1061 = vmatpush.msra.mxu2 %v1021_v24 }
  0xd2   :  { %931 = vmatpush.msra.mxu0 %v454_v26  ;;  %v1020_v26 = vld [vmem:[%s2939_s3 + $0x60] sm:$0xff]  ;;  %1062 = vmatpush.msra.mxu2 %v1017_v25 }
  0xd3   :  { %1041 = vmatpush.msra.mxu1 %v1020_v26  ;;  %v1222_v26 = vld [vmem:[%s2938_s4 + $0x68] sm:$0xff] }
  0xd4   :  { %932 = vmatpush.msra.mxu0 %v453_v27  ;;  %v540_v41 = vpop.f32.mrf.mxu0  ;;  %v1022_v27 = vld [vmem:[%s2939_s3 + $0x70] sm:$0xff]  ;;  %1124 = vmatpush.msrb.mxu2 %v1012_v36  ;;  %v1253_v36 = vld [vmem:[%s2938_s4 + $0x160] sm:$0xff] }
  0xd5   :  { %v541_v42 = vadd.f32 %v540_v41, %v521_v40  ;;  %1081 = vmatpush.msra.mxu3 %v1022_v27  ;;  %v1019_v40 = vld [vmem:[%s2939_s3 + $0x58] sm:$0xff]  ;;  %v1009_v41 = vld [vmem:[%s2939_s3 + $0x8] sm:$0xff] }
  0xd6   :  { %933 = vmatpush.msra.mxu0 %v452_v28  ;;  %v1016_v28 = vld [vmem:[%s2939_s3 + $0x40] sm:$0xff]  ;;  %1125 = vmatpush.msrb.mxu2 %v1008_v37  ;;  %v1219_v37 = vld [vmem:[%s2938_s4 + $0x50] sm:$0xff] }
  0xd7   :  { %v560_v43 = vpop.f32.mrf.mxu1  ;;  %v580_v45 = vpop.f32.mrf.mxu2  ;;  %1042 = vmatpush.msra.mxu1 %v1016_v28 }
  0xd8   :  { %934 = vmatpush.msra.mxu0 %v451_v29  ;;  %v561_v44 = vadd.f32 %v560_v43, %v541_v42  ;;  %v1018_v29 = vld [vmem:[%s2939_s3 + $0x50] sm:$0xff] }
  0xd9   :  { %1082 = vmatpush.msra.mxu3 %v1018_v29  ;;  %1101 = vmatpush.msrb.mxu1 %v1023_v38  ;;  %v1235_v38 = vld [vmem:[%s2938_s4 + $0xd0] sm:$0xff] }
  0xda   :  { %935 = vmatpush.msra.mxu0 %v450_v30  ;;  %v581_v46 = vadd.f32 %v580_v45, %v561_v44  ;;  %v600_v47 = vpop.f32.mrf.mxu3 }
  0xdb   :  { %1144 = vmatpush.msrb.mxu3 %v1013_v39  ;;  %1102 = vmatpush.msrb.mxu1 %v1019_v40  ;;  %v1252_v39 = vld [vmem:[%s2938_s4 + $0x158] sm:$0xff]  ;;  %v1271_v40 = vld [vmem:[%s2938_s4 + $0x1f0] sm:$0xff] }
  0xdc   :  { %936 = vmatpush.msra.mxu0 %v449_v31  ;;  %v601_v48 = vadd.f32 %v600_v47, %v581_v46 }
  0xdd   :  { %v620_v49 = vpop.f32.mrf.mxu0  ;;  %1145 = vmatpush.msrb.mxu3 %v1009_v41  ;;  %v1218_v41 = vld [vmem:[%s2938_s4 + $0x48] sm:$0xff] }
  0xde   :  { %937 = vmatpush.msra.mxu0 %v448_v32  ;;  %v621_v51 = vadd.f32 %v620_v49, %v601_v48 }
  0xe0   :  { %938 = vmatpush.msra.mxu0 %v447_v33 }
  0xe1   :  { %939 = vmatmul.f32.vlgmr.msra.gmra.mxu0 %v78_v34 }
  0xe4   :  { %v640_v50 = vpop.f32.mrf.mxu1 }
  0xe5   :  { %v641_v53 = vadd.f32 %v640_v50, %v621_v51 }
  0xea   :  { %v660_v52 = vpop.f32.mrf.mxu2 }
  0xeb   :  { %v661_v54 = vadd.f32 %v660_v52, %v641_v53 }
  0xed   :  { %v680_v55 = vpop.f32.mrf.mxu3 }
  0xee   :  { %v681_v57 = vadd.f32 %v680_v55, %v661_v54 }
  0xf9   :  { %v700_v56 = vpop.f32.mrf.mxu0 }
  0xfa   :  { %v701_v59 = vadd.f32 %v700_v56, %v681_v57  ;;  %v1240_v57 = vld [vmem:[%s2938_s4 + $0xf8] sm:$0xff] }
  0xfb   :  { %1295 = vmatpush.msrb.mxu0 %v1240_v57  ;;  %v1214_v57 = vld [vmem:[%s2938_s4 + $0x28] sm:$0xff] }
 0x106   :  { %v720_v58 = vpop.f32.mrf.mxu1 }
 0x107   :  { %v721_v61 = vadd.f32 %v720_v58, %v701_v59  ;;  %v1239_v59 = vld [vmem:[%s2938_s4 + $0xf0] sm:$0xff] }
 0x108   :  { %1296 = vmatpush.msrb.mxu0 %v1239_v59  ;;  %v1247_v59 = vld [vmem:[%s2938_s4 + $0x130] sm:$0xff] }
 0x10c   :  { %v740_v60 = vpop.f32.mrf.mxu2 }
 0x10d   :  { %v741_v62 = vadd.f32 %v740_v60, %v721_v61  ;;  %v1238_v61 = vld [vmem:[%s2938_s4 + $0xe8] sm:$0xff] }
 0x10e   :  { %1297 = vmatpush.msrb.mxu0 %v1238_v61  ;;  %v1213_v61 = vld [vmem:[%s2938_s4 + $0x20] sm:$0xff] }
 0x10f   :  { %v760_v63 = vpop.f32.mrf.mxu3 }
 0x110   :  { %v761_v1 = vadd.f32 %v760_v63, %v741_v62 }
 0x11b   :  { %v780_v0 = vpop.f32.mrf.mxu0 }
 0x11c   :  { %v781_v3 = vadd.f32 %v780_v0, %v761_v1  ;;  %v1237_v1 = vld [vmem:[%s2938_s4 + $0xe0] sm:$0xff] }
 0x11d   :  { %1298 = vmatpush.msrb.mxu0 %v1237_v1  ;;  %v1212_v1 = vld [vmem:[%s2938_s4 + $0x18] sm:$0xff] }
 0x128   :  { %v800_v2 = vpop.f32.mrf.mxu1 }
 0x129   :  { %v801_v5 = vadd.f32 %v800_v2, %v781_v3  ;;  %v1236_v3 = vld [vmem:[%s2938_s4 + $0xd8] sm:$0xff] }
 0x12a   :  { %1299 = vmatpush.msrb.mxu0 %v1236_v3  ;;  %v1245_v3 = vld [vmem:[%s2938_s4 + $0x120] sm:$0xff] }
 0x12c   :  { %1300 = vmatpush.msrb.mxu0 %v1235_v38 }
 0x12e   :  { %v820_v4 = vpop.f32.mrf.mxu2 }
 0x12f   :  { %v821_v6 = vadd.f32 %v820_v4, %v801_v5 }
 0x131   :  { %v840_v7 = vpop.f32.mrf.mxu3 }
 0x132   :  { %v841_v9 = vadd.f32 %v840_v7, %v821_v6 }
 0x13d   :  { %v860_v8 = vpop.f32.mrf.mxu0 }
 0x13e   :  { %v861_v11 = vadd.f32 %v860_v8, %v841_v9 }
 0x14a   :  { %v880_v10 = vpop.f32.mrf.mxu1 }
 0x14b   :  { %v881_v13 = vadd.f32 %v880_v10, %v861_v11 }
 0x150   :  { %v900_v12 = vpop.f32.mrf.mxu2 }
 0x151   :  { %v901_v14 = vadd.f32 %v900_v12, %v881_v13 }
 0x152   :  { %v920_v15 = vpop.f32.mrf.mxu3 }
 0x153   :  { %v921_v16 = vadd.f32 %v920_v15, %v901_v14  ;;  %v1015_v15 = vld [vmem:[%s2939_s3 + $0x38] sm:$0xff] }
 0x15e   :  { %v940_v17 = vpop.f32.mrf.mxu0 }
 0x15f   :  { %v2668_v18 = vadd.f32 %v940_v17, %v921_v16  ;;  %v1014_v17 = vld [vmem:[%s2939_s3 + $0x30] sm:$0xff] }
 0x161   :  { %v976_v19 = vmul.f32 %v2668_v18, %v2668_v18 }
 0x163   :  { %v977_v20 = vsel %vm944_vm1, %v976_v19, 0.0  ;;  %v1224_v19 = vld [vmem:[%s2938_s4 + $0x78] sm:$0xff] }
 0x164   :  { %978 = vadd.xlane.f32.xlu0 %v977_v20 }
 0x16c   :  { %946 = vadd.xlane.f32.xlu0 %v945_v22  ;;  %v1010_v22 = vld [vmem:[%s2939_s3 + $0x10] sm:$0xff] }
 0x1d7   :  { %v979_v23 = vpop.xlane.xlu0 %978 }
 0x1d8   :  { %1371 = vrsqrt.f32 %v979_v23  ;;  %vm987_vm2 = vcmp.eq.f32.partialorder %v979_v23, inf  ;;  %v990_v48 = vand.u32 2147483648, %v979_v23  ;;  %vm989_vm3 = vcmp.eq.f32.partialorder %v979_v23, 0.0 }
 0x1de   :  { %v1372_v30 = vpop.eup %1371 }
 0x1df   :  { %v981_v31 = vmul.f32 %v1372_v30, %v979_v23  ;;  %v947_v32 = vpop.xlane.xlu0 %946 }
 0x1e0   :  { %1373 = vrsqrt.f32 %v947_v32  ;;  %vm955_vm4 = vcmp.eq.f32.partialorder %v947_v32, inf  ;;  %v958_v56 = vand.u32 2147483648, %v947_v32  ;;  %vm957_vm5 = vcmp.eq.f32.partialorder %v947_v32, 0.0 }
 0x1e1   :  { %v982_v33 = vmul.f32 %v1372_v30, %v981_v31  ;;  %v1221_v31 = vld [vmem:[%s2938_s4 + $0x60] sm:$0xff] }
 0x1e3   :  { %v983_v34 = vmul.f32 0.5, %v982_v33  ;;  %v1220_v33 = vld [vmem:[%s2938_s4 + $0x58] sm:$0xff] }
 0x1e5   :  { %v984_v42 = vsub.f32 1.5, %v983_v34  ;;  %v1254_v34 = vld [vmem:[%s2938_s4 + $0x168] sm:$0xff] }
 0x1e6   :  { %v1374_v43 = vpop.eup %1373 }
 0x1e7   :  { %v985_v44 = vmul.f32 %v1372_v30, %v984_v42  ;;  %v949_v45 = vmul.f32 %v1374_v43, %v947_v32  ;;  %v1256_v30 = vld [vmem:[%s2938_s4 + $0x178] sm:$0xff]  ;;  %v1234_v42 = vld [vmem:[%s2938_s4 + $0xc8] sm:$0xff] }
 0x1e8   :  { %1301 = vmatpush.msrb.mxu0 %v1234_v42 }
 0x1e9   :  { %v986_v46 = vmul.f32 %v985_v44, %v979_v23  ;;  %v950_v47 = vmul.f32 %v1374_v43, %v949_v45  ;;  %v1270_v44 = vld [vmem:[%s2938_s4 + $0x1e8] sm:$0xff]  ;;  %v1217_v45 = vld [vmem:[%s2938_s4 + $0x40] sm:$0xff] }
 0x1eb   :  { %v988_v49 = vsel %vm987_vm2, %v979_v23, %v986_v46  ;;  %v951_v50 = vmul.f32 0.5, %v950_v47  ;;  %v1223_v23 = vld [vmem:[%s2938_s4 + $0x70] sm:$0xff]  ;;  %v1233_v46 = vld [vmem:[%s2938_s4 + $0xc0] sm:$0xff]  ;;  %v1250_v47 = vld [vmem:[%s2938_s4 + $0x148] sm:$0xff] }
 0x1ec   :  { %v991_v51 = vsel %vm989_vm3, %v990_v48, %v988_v49  ;;  %v1269_v48 = vld [vmem:[%s2938_s4 + $0x1e0] sm:$0xff]  ;;  %1302 = vmatpush.msrb.mxu0 %v1233_v46  ;;  %v1216_v49 = vld [vmem:[%s2938_s4 + $0x38] sm:$0xff] }
 0x1ed   :  { %v992_v52 = vadd.f32 1e-06, %v991_v51  ;;  %v952_v53 = vsub.f32 1.5, %v951_v50  ;;  %v1232_v50 = vld [vmem:[%s2938_s4 + $0xb8] sm:$0xff]  ;;  %v1249_v51 = vld [vmem:[%s2938_s4 + $0x140] sm:$0xff] }
 0x1ee   :  { %1303 = vmatpush.msrb.mxu0 %v1232_v50 }
 0x1ef   :  { %1375 = vrcp.f32 %v992_v52  ;;  %v953_v54 = vmul.f32 %v1374_v43, %v952_v53  ;;  %v1004_v4 = vand.u32 2147483648, %v992_v52  ;;  %v1002_v6 = vand.u32 2147483647, %v992_v52  ;;  %v1251_v43 = vld [vmem:[%s2938_s4 + $0x150] sm:$0xff] }
 0x1f0   :  { %vm998_vm7 = vweird.f32 %v992_v52  ;;  %v1215_v53 = vld [vmem:[%s2938_s4 + $0x30] sm:$0xff] }
 0x1f1   :  { %v954_v55 = vmul.f32 %v953_v54, %v947_v32  ;;  %v1005_v9 = vor.u32 1.1754944e-38, %v1004_v4  ;;  %vm1003_vm9 = vcmp.eq.f32.partialorder %v1002_v6, 8.507059e+37  ;;  %v1231_v54 = vld [vmem:[%s2938_s4 + $0xb0] sm:$0xff]  ;;  %v1264_v4 = vld [vmem:[%s2938_s4 + $0x1b8] sm:$0xff] }
 0x1f2   :  { %1304 = vmatpush.msrb.mxu0 %v1231_v54  ;;  %v1227_v6 = vld [vmem:[%s2938_s4 + $0x90] sm:$0xff] }
 0x1f3   :  { %v956_v58 = vsel %vm955_vm4, %v947_v32, %v954_v55  ;;  %v1272_v32 = vld [vmem:[%s2938_s4 + $0x1f8] sm:$0xff] }
 0x1f4   :  { %v959_v60 = vsel %vm957_vm5, %v958_v56, %v956_v58  ;;  %v1248_v55 = vld [vmem:[%s2938_s4 + $0x138] sm:$0xff]  ;;  %v1267_v56 = vld [vmem:[%s2938_s4 + $0x1d0] sm:$0xff]  ;;  %v1230_v58 = vld [vmem:[%s2938_s4 + $0xa8] sm:$0xff] }
 0x1f5   :  { %v1376_v62 = vpop.eup %1375  ;;  %v960_v63 = vadd.f32 1e-06, %v959_v60  ;;  %v1266_v60 = vld [vmem:[%s2938_s4 + $0x1c8] sm:$0xff]  ;;  %1305 = vmatpush.msrb.mxu0 %v1230_v58 }
 0x1f6   :  { %v994_v0 = vmul.f32 %v1376_v62, %v992_v52  ;;  %vm999_vm6 = vweird.f32 %v1376_v62  ;;  %v1268_v52 = vld [vmem:[%s2938_s4 + $0x1d8] sm:$0xff] }
 0x1f7   :  { %1377 = vrcp.f32 %v960_v63  ;;  %vm1000_vm8 = vmor %vm998_vm7, %vm999_vm6  ;;  %v972_v16 = vand.u32 2147483648, %v960_v63  ;;  %vm966_vm11 = vweird.f32 %v960_v63 }
 0x1f8   :  { %v995_v2 = vsub.f32 1.0, %v994_v0  ;;  %v1265_v0 = vld [vmem:[%s2938_s4 + $0x1c0] sm:$0xff] }
 0x1f9   :  { %v973_v25 = vor.u32 1.1754944e-38, %v972_v16  ;;  %v1261_v16 = vld [vmem:[%s2938_s4 + $0x1a0] sm:$0xff] }
 0x1fa   :  { %v996_v5 = vmul.f32 %v1376_v62, %v995_v2  ;;  %v1228_v2 = vld [vmem:[%s2938_s4 + $0x98] sm:$0xff] }
 0x1fc   :  { %v997_v7 = vadd.f32 %v1376_v62, %v996_v5  ;;  %v1211_v5 = vld [vmem:[%s2938_s4 + $0x10] sm:$0xff] }
 0x1fd   :  { %v1378_v8 = vpop.eup %1377 }
 0x1fe   :  { %v1001_v10 = vsel %vm1000_vm8, %v1376_v62, %v997_v7  ;;  %v962_v11 = vmul.f32 %v1378_v8, %v960_v63  ;;  %vm967_vm10 = vweird.f32 %v1378_v8  ;;  %v1229_v62 = vld [vmem:[%s2938_s4 + $0xa0] sm:$0xff]  ;;  %v1244_v7 = vld [vmem:[%s2938_s4 + $0x118] sm:$0xff] }
 0x1ff   :  { %v1006_v12 = vsel %vm1003_vm9, %v1005_v9, %v1001_v10  ;;  %vm968_vm12 = vmor %vm966_vm11, %vm967_vm10  ;;  %1306 = vmatpush.msrb.mxu0 %v1229_v62  ;;  %v1210_v9 = vld [vmem:[%s2938_s4 + $0x8] sm:$0xff] }
 0x200   :  { %v1007_v13 = vmul.f32 %v1006_v12, %v2668_v18  ;;  %v963_v14 = vsub.f32 1.0, %v962_v11  ;;  %v970_v18 = vand.u32 2147483647, %v960_v63  ;;  %v1246_v63 = vld [vmem:[%s2938_s4 + $0x128] sm:$0xff]  ;;  %v1243_v11 = vld [vmem:[%s2938_s4 + $0x110] sm:$0xff] }
 0x201   :  { %1307 = vmatpush.msrb.mxu0 %v1228_v2  ;;  %v1226_v10 = vld [vmem:[%s2938_s4 + $0x88] sm:$0xff] }
 0x202   :  { %1361 = vmatmul.msk.f32.vlgmr.msra.gmra.mxu1 %vm944_vm1, %v1007_v13  ;;  %1362 = vmatmul.msk.f32.vlgmr.msra.gmra.mxu2 %vm944_vm1, %v1007_v13  ;;  %v964_v20 = vmul.f32 %v1378_v8, %v963_v14  ;;  %vm971_vm13 = vcmp.eq.f32.partialorder %v970_v18, 8.507059e+37  ;;  %v1262_v12 = vld [vmem:[%s2938_s4 + $0x1a8] sm:$0xff]  ;;  %v1225_v14 = vld [vmem:[%s2938_s4 + $0x80] sm:$0xff] }
 0x203   :  { %1363 = vmatmul.msk.f32.vlgmr.msra.gmra.mxu3 %vm944_vm1, %v1007_v13  ;;  %1184 = vmatpush.msra.mxu2 %v1015_v15  ;;  %v1242_v15 = vld [vmem:[%s2938_s4 + $0x108] sm:$0xff] }
 0x204   :  { %v965_v24 = vadd.f32 %v1378_v8, %v964_v20  ;;  %1164 = vmatpush.msra.mxu1 %v1014_v17  ;;  %1275 = vmatpush.msra.mxu3 %v1224_v19  ;;  %v1241_v17 = vld [vmem:[%s2938_s4 + $0x100] sm:$0xff]  ;;  %v1260_v19 = vld [vmem:[%s2938_s4 + $0x198] sm:$0xff]  ;;  %v1259_v20 = vld [vmem:[%s2938_s4 + $0x190] sm:$0xff] }
 0x205   :  { %1185 = vmatpush.msra.mxu2 %v1011_v21  ;;  %1308 = vmatpush.msrb.mxu0 %v1227_v6  ;;  %v1258_v18 = vld [vmem:[%s2938_s4 + $0x188] sm:$0xff]  ;;  %v1257_v21 = vld [vmem:[%s2938_s4 + $0x180] sm:$0xff] }
 0x206   :  { %v969_v27 = vsel %vm968_vm12, %v1378_v8, %v965_v24  ;;  %1165 = vmatpush.msra.mxu1 %v1010_v22  ;;  %1276 = vmatpush.msra.mxu3 %v1223_v23  ;;  %v1263_v8 = vld [vmem:[%s2938_s4 + $0x1b0] sm:$0xff] }
 0x207   :  { %v974_v28 = vsel %vm971_vm13, %v973_v25, %v969_v27  ;;  %1309 = vmatpush.msrb.mxu0 %v1226_v10 }
 0x208   :  { %v975_v29 = vmul.f32 %v974_v28, %v2666_v35  ;;  %1277 = vmatpush.msra.mxu3 %v1222_v26  ;;  %v1255_v35 = vld [vmem:[%s2938_s4 + $0x170] sm:$0xff] }
 0x209   :  { %1310 = vmatpush.msrb.mxu0 %v1225_v14  ;;  %v1369_v26 = vld [vmem:[%s2939_s3 + $0x80] ss:$8 sm:$0xf] }
 0x20a   :  { %1364 = vmatmul.msk.f32.vlgmr.msrb.gmra.mxu1 %vm944_vm1, %v1007_v13  ;;  %1365 = vmatmul.msk.f32.vlgmr.msrb.gmra.mxu2 %vm944_vm1, %v975_v29  ;;  %v1209_v13 = vld [vmem:[%s2938_s4] sm:$0xff]  ;;  %v1193_v27 = vperm.slane %v1369_v26, 0  ;;  %v1196_v42 = vperm.slane %v1369_v26, 3 }
 0x20b   :  { %1366 = vmatmul.msk.f32.vlgmr.msrb.gmra.mxu3 %vm944_vm1, %v975_v29  ;;  %1315 = vmatpush.msrb.mxu1 %v1256_v30 }
 0x20c   :  { %1278 = vmatpush.msra.mxu3 %v1221_v31  ;;  %1335 = vmatpush.msrb.mxu2 %v1272_v32  ;;  %v1195_v32 = vperm.slane %v1369_v26, 2 }
 0x20d   :  { %1316 = vmatpush.msrb.mxu1 %v1255_v35 }
 0x20e   :  { %1279 = vmatpush.msra.mxu3 %v1220_v33  ;;  %1336 = vmatpush.msrb.mxu2 %v1271_v40 }
 0x20f   :  { %1317 = vmatpush.msrb.mxu1 %v1254_v34 }
 0x210   :  { %1280 = vmatpush.msra.mxu3 %v1219_v37  ;;  %1337 = vmatpush.msrb.mxu2 %v1270_v44 }
 0x211   :  { %1318 = vmatpush.msrb.mxu1 %v1253_v36 }
 0x212   :  { %1367 = vmatmul.msk.f32.vlgmr.msra.gmra.mxu1 %vm944_vm1, %v975_v29  ;;  %1368 = vmatmul.msk.f32.vlgmr.msra.gmra.mxu2 %vm944_vm1, %v975_v29  ;;  %v1194_v29 = vperm.slane %v1369_v26, 1 }
 0x213   :  { %1319 = vmatpush.msrb.mxu1 %v1252_v39  ;;  %1281 = vmatpush.msra.mxu3 %v1218_v41 }
 0x214   :  { %1338 = vmatpush.msrb.mxu2 %v1269_v48 }
 0x215   :  { %1320 = vmatpush.msrb.mxu1 %v1251_v43  ;;  %1282 = vmatpush.msra.mxu3 %v1217_v45 }
 0x216   :  { %1339 = vmatpush.msrb.mxu2 %v1268_v52 }
 0x217   :  { %1321 = vmatpush.msrb.mxu1 %v1250_v47  ;;  %1283 = vmatpush.msra.mxu3 %v1216_v49  ;;  %v1370_v47 = vld [vmem:[%s2938_s4 + $0x200] ss:$0 sm:$0xff] }
 0x218   :  { %1340 = vmatpush.msrb.mxu2 %v1267_v56 }
 0x219   :  { %1322 = vmatpush.msrb.mxu1 %v1249_v51  ;;  %1284 = vmatpush.msra.mxu3 %v1215_v53 }
 0x21a   :  { %1341 = vmatpush.msrb.mxu2 %v1266_v60 }
 0x21b   :  { %1323 = vmatpush.msrb.mxu1 %v1248_v55  ;;  %1285 = vmatpush.msra.mxu3 %v1214_v57 }
 0x21c   :  { %1342 = vmatpush.msrb.mxu2 %v1265_v0 }
 0x21d   :  { %1324 = vmatpush.msrb.mxu1 %v1247_v59  ;;  %1286 = vmatpush.msra.mxu3 %v1213_v61 }
 0x21e   :  { %1343 = vmatpush.msrb.mxu2 %v1264_v4 }
 0x21f   :  { %1325 = vmatpush.msrb.mxu1 %v1246_v63  ;;  %1287 = vmatpush.msra.mxu3 %v1212_v1 }
 0x220   :  { %1344 = vmatpush.msrb.mxu2 %v1263_v8 }
 0x221   :  { %1326 = vmatpush.msrb.mxu1 %v1245_v3  ;;  %1288 = vmatpush.msra.mxu3 %v1211_v5 }
 0x222   :  { %1345 = vmatpush.msrb.mxu2 %v1262_v12 }
 0x223   :  { %1327 = vmatpush.msrb.mxu1 %v1244_v7  ;;  %1289 = vmatpush.msra.mxu3 %v1210_v9 }
 0x224   :  { %1346 = vmatpush.msrb.mxu2 %v1261_v16 }
 0x225   :  { %1328 = vmatpush.msrb.mxu1 %v1243_v11  ;;  %1290 = vmatpush.msra.mxu3 %v1209_v13 }
 0x226   :  { %1347 = vmatpush.msrb.mxu2 %v1260_v19 }
 0x227   :  { %1329 = vmatpush.msrb.mxu1 %v1242_v15 }
 0x228   :  { %1348 = vmatpush.msrb.mxu2 %v1259_v20 }
 0x229   :  { %1330 = vmatpush.msrb.mxu1 %v1241_v17 }
 0x22a   :  { %1349 = vmatpush.msrb.mxu2 %v1258_v18 }
 0x22c   :  { %1350 = vmatpush.msrb.mxu2 %v1257_v21 }
 0x27f   :  { %v1044_v22 = vpop.f32.mrf.mxu1 }
 0x285   :  { %v1064_v23 = vpop.f32.mrf.mxu2 }
 0x286   :  { %v1084_v24 = vpop.f32.mrf.mxu3 }
 0x287   :  { %v1104_v25 = vpop.f32.mrf.mxu1 }
 0x28d   :  { %v1127_v28 = vpop.f32.mrf.mxu2 }
 0x28e   :  { %v1128_v30 = vadd.f32 %v1127_v28, %v1044_v22  ;;  %v1147_v31 = vpop.f32.mrf.mxu3 }
 0x28f   :  { %v1148_v35 = vadd.f32 %v1147_v31, %v1064_v23  ;;  %v1167_v33 = vpop.f32.mrf.mxu1 }
 0x290   :  { %v1201_v34 = vadd.f32 %v1193_v27, %v1128_v30  ;;  %v1168_v36 = vadd.f32 %v1167_v33, %v1084_v24 }
 0x291   :  { %v1202_v37 = vadd.f32 %v1194_v29, %v1148_v35 }
 0x292   :  { %v1205_v38 = vmax.f32 %v1201_v34, 0.0  ;;  %v1203_v39 = vadd.f32 %v1195_v32, %v1168_v36 }
 0x293   :  { %v1206_v40 = vmax.f32 %v1202_v37, 0.0 }
 0x294   :  { %v1207_v41 = vmax.f32 %v1203_v39, 0.0  ;;  %1291 = vmatmul.f32.vlgmr.msra.gmra.mxu3 %v1205_v38 }
 0x295   :  { %1311 = vmatmul.f32.vlgmr.msrb.gmra.mxu0 %v1206_v40  ;;  %v1187_v43 = vpop.f32.mrf.mxu2 }
 0x296   :  { %v1188_v44 = vadd.f32 %v1187_v43, %v1104_v25  ;;  %1331 = vmatmul.f32.vlgmr.msrb.gmra.mxu1 %v1207_v41 }
 0x298   :  { %v1204_v45 = vadd.f32 %v1196_v42, %v1188_v44 }
 0x29a   :  { %v1208_v46 = vmax.f32 %v1204_v45, 0.0 }
 0x29c   :  { %1351 = vmatmul.f32.vlgmr.msrb.gmra.mxu2 %v1208_v46 }
 0x312   :  { %v1312_v50 = vpop.f32.mrf.mxu0 }
 0x313   :  { %v1332_v52 = vpop.f32.mrf.mxu1 }
 0x317   :  { %v1292_v48 = vpop.f32.mrf.mxu3 }
 0x318   :  { %v1293_v49 = vadd.f32 %v1370_v47, %v1292_v48 }
 0x31a   :  { %v1313_v51 = vadd.f32 %v1312_v50, %v1293_v49 }
 0x31c   :  { %v1333_v53 = vadd.f32 %v1332_v52, %v1313_v51 }
 0x31f   :  { %v1352_v54 = vpop.f32.mrf.mxu2 }
 0x320   :  { %v1353_v55 = vadd.f32 %v1352_v54, %v1333_v53 }
 0x322   :  { %1355 = vst [vmem:[%s2940_s5] sm:$0xff] %v1353_v55 }

</bundles_post_ra>
